<compile_context>
chip_gen: v7x
topology: tpu7x:2x2x1
jax: 0.10.0
libtpu: 0.0.40
codegen_flags: <defaults>
</compile_context>

<pallas_src>
import functools

import jax
import jax.numpy as jnp
from jax.experimental import pallas as pl
from jax.experimental.pallas import tpu as pltpu


def _round_up(x, n):
    return (x + n - 1) // n * n


# ----------------------------------------------------------------------------
# Capability probe / compiler-parameter helpers.
# ----------------------------------------------------------------------------
@functools.lru_cache(maxsize=1)
def _single_buffered_weights_supported():
    """Probe whether pipeline_mode=pl.Buffered(1) is accepted on this JAX/Mosaic.

    Constant-index weight blocks gain nothing from double-buffering; Buffered(1)
    halves their VMEM footprint (matters on v7x's 64 MiB VMEM).  Older JAX may
    not support pipeline_mode on pallas_call BlockSpecs, so probe once and fall
    back gracefully.
    """
    try:
        def _probe_kernel(x_ref, o_ref):
            o_ref[...] = x_ref[...] + 1.0

        out = pl.pallas_call(
            _probe_kernel,
            out_shape=jax.ShapeDtypeStruct((16, 128), jnp.float32),
            grid=(2,),
            in_specs=[pl.BlockSpec((8, 128), lambda i: (0, 0),
                                   pipeline_mode=pl.Buffered(1))],
            out_specs=pl.BlockSpec((8, 128), lambda i: (i, 0)),
        )(jnp.ones((8, 128), jnp.float32))
        jax.block_until_ready(out)
        return True
    except Exception:  # noqa: BLE001 - any failure => use default buffering
        return False


@functools.lru_cache(maxsize=1)
def _default_vmem_limit_bytes():
    """~96 MiB on 128-MiB-VMEM parts (v5e/v6e), ~48 MiB on v7x (64 MiB physical)."""
    try:
        cap = int(pltpu.get_tpu_info().vmem_capacity_bytes)
    except Exception:  # noqa: BLE001 - conservative fallback
        cap = 128 * 1024 * 1024
    return min(100 * 1024 * 1024, (cap * 3) // 4)


def _const_weight_spec(shape, single_buffered):
    imap = lambda i, j: (0,) * len(shape)  # noqa: E731
    if single_buffered:
        return pl.BlockSpec(shape, imap, pipeline_mode=pl.Buffered(1))
    return pl.BlockSpec(shape, imap)


def _pick_doclen_tile(m, target=512):
    """Largest multiple-of-128 tile <= target that divides doclen, else whole doclen.

    TODO(synk): for ragged/long doclen not divisible by 128, pad m and mask the
    padded positions to -inf before the argmax instead of falling back to a
    single tile.
    """
    if m <= target:
        return m
    for t in range(target, 127, -128):
        if t % 128 == 0 and m % t == 0:
            return t
    return m


# ----------------------------------------------------------------------------
# Pallas kernel: fused start+end HMN forward for one (batch, doclen-tile) block.
# ----------------------------------------------------------------------------
def _hmn_fused_kernel(bias_ref, u_ref,
                      w1cat_ref,
                      w2s_ref, b2s_ref, w3as_ref, w3bs_ref, b3s_ref,
                      w2e_ref, b2e_ref, w3ae_ref, w3be_ref, b3e_ref,
                      out_s_ref, out_e_ref, *, pool, h_pad):
    u_b = u_ref[0]                                   # [tm, 2*h_pad]  bf16
    bias1 = bias_ref[0]                              # [1, 2*pool*h_pad]  f32
    ph = pool * h_pad

    # Fused start+end layer-1: a single wide MXU pass sharing the u LHS.
    # The hoisted per-batch bias (r @ W1_r + b1 for both HMNs) is added in f32.
    y1 = jnp.dot(u_b, w1cat_ref[...],
                 preferred_element_type=jnp.float32) + bias1      # [tm, 2*p*h_pad]

    def finish(y1_half, w2, b2, w3a, w3b, b3, out_ref):
        # Pool slices are h_pad-aligned (lane-tile aligned) -> pure VALU maxes.
        m1 = y1_half[:, :h_pad]
        for k in range(1, pool):
            m1 = jnp.maximum(m1, y1_half[:, k * h_pad:(k + 1) * h_pad])   # [tm, h_pad]
        m1_bf = m1.astype(jnp.bfloat16)

        y2 = jnp.dot(m1_bf, w2[...],
                     preferred_element_type=jnp.float32) + b2[...]        # [tm, p*h_pad]
        m2 = y2[:, :h_pad]
        for k in range(1, pool):
            m2 = jnp.maximum(m2, y2[:, k * h_pad:(k + 1) * h_pad])        # [tm, h_pad]

        # Maxout 3 (output width 1): pool is the matmul N dim; W3 is split so
        # cat([m1, m2]) never materializes.
        y3 = (jnp.dot(m1_bf, w3a[...], preferred_element_type=jnp.float32)
              + jnp.dot(m2.astype(jnp.bfloat16), w3b[...],
                        preferred_element_type=jnp.float32)
              + b3[...])                                                  # [tm, pool]
        scores = jnp.max(y3, axis=-1)                                     # [tm]
        # TODO(synk): verify in the bundle dump that this sublane->lane reshape
        # lowers to an XLU relayout hidden under the matmuls, not a VMEM copy.
        out_ref[...] = scores.reshape(1, 1, scores.shape[0])              # lane-dense

    finish(y1[:, :ph], w2s_ref, b2s_ref, w3as_ref, w3bs_ref, b3s_ref, out_s_ref)
    finish(y1[:, ph:], w2e_ref, b2e_ref, w3ae_ref, w3be_ref, b3e_ref, out_e_ref)


# ----------------------------------------------------------------------------
# Wrapper: one fused pallas_call computing start and end scores for all docs.
# ----------------------------------------------------------------------------
def hmn_scores_fused(u_pad, bias_cat, fused, *, pool_size, hidden, lane=128,
                     doclen_tile=512):
    """u_pad: [b, m, 2*h_pad] bf16; bias_cat: [b, 1, 2*p*h_pad] f32.

    Returns (start_scores [b, m], end_scores [b, m]) in f32.
    """
    b, m, two_hpad = u_pad.shape
    h_pad = _round_up(hidden, lane)
    ph2 = 2 * pool_size * h_pad
    tm = _pick_doclen_tile(m, doclen_tile)
    single_buf = _single_buffered_weights_supported()

    weights = [fused["w1cat"],
               fused["w2s"], fused["b2s"], fused["w3as"], fused["w3bs"], fused["b3s"],
               fused["w2e"], fused["b2e"], fused["w3ae"], fused["w3be"], fused["b3e"]]
    weight_specs = [_const_weight_spec(w.shape, single_buf) for w in weights]

    kernel = functools.partial(_hmn_fused_kernel, pool=pool_size, h_pad=h_pad)

    out_s, out_e = pl.pallas_call(
        kernel,
        out_shape=(jax.ShapeDtypeStruct((b, 1, m), jnp.float32),
                   jax.ShapeDtypeStruct((b, 1, m), jnp.float32)),
        grid=(b, m // tm),
        in_specs=[
            pl.BlockSpec((1, 1, ph2), lambda i, j: (i, 0, 0)),        # hoisted bias
            # TODO(synk): if profiling on v5e shows exposed u DMA, add
            # pipeline_mode=pl.Buffered(3) to this u spec.
            pl.BlockSpec((1, tm, two_hpad), lambda i, j: (i, j, 0)),  # u (bf16)
        ] + weight_specs,
        out_specs=(pl.BlockSpec((1, 1, tm), lambda i, j: (i, 0, j)),
                   pl.BlockSpec((1, 1, tm), lambda i, j: (i, 0, j))),
        compiler_params=pltpu.CompilerParams(
            dimension_semantics=("parallel", "parallel"),
            vmem_limit_bytes=_default_vmem_limit_bytes()),
    )(bias_cat, u_pad, *weights)
    return out_s[:, 0, :], out_e[:, 0, :]                            # [b, m] each


# ----------------------------------------------------------------------------
# Parameter init (PyTorch layouts) + conversion to kernel layouts.
# ----------------------------------------------------------------------------
def init_hmn_params(key, h, p):
    ks = jax.random.split(key, 8)
    s = 0.1
    return dict(
        Wmlp=jax.random.normal(ks[0], (h, 5 * h)) * s,    # nn.Linear(5h, h)
        bmlp=jax.random.normal(ks[1], (h,)) * s,
        W1=jax.random.normal(ks[2], (h * p, 3 * h)) * s,  # Maxout(3h, h, p)
        b1=jax.random.normal(ks[3], (h * p,)) * s,
        W2=jax.random.normal(ks[4], (h * p, h)) * s,      # Maxout(h, h, p)
        b2=jax.random.normal(ks[5], (h * p,)) * s,
        W3=jax.random.normal(ks[6], (1 * p, 2 * h)) * s,  # Maxout(2h, 1, p)
        b3=jax.random.normal(ks[7], (1 * p,)) * s,
    )


def hmn_to_kernel_layout(pd, h, p, lane=128, compute_dtype=jnp.bfloat16):
    """PyTorch-layout HMN params -> kernel layout with lane-aligned padding.

    Maxout Linear W has shape [out*p, in] with row index o*p + k.  The kernel
    wants a stacked [in, p*out_pad] matrix whose column index is k*out_pad + o,
    so pool slice k is the contiguous, 128-aligned lane block
    [:, k*out_pad:(k+1)*out_pad].  Padded rows/cols are zero (results unchanged).
    """
    h_pad = _round_up(h, lane)

    def stack_pool(W, b, out_dim, out_pad):
        in_dim = W.shape[-1]
        Ws = W.reshape(out_dim, p, in_dim).transpose(2, 1, 0)       # [in, p, out]
        Ws = jnp.pad(Ws, ((0, 0), (0, 0), (0, out_pad - out_dim)))
        Ws = Ws.reshape(in_dim, p * out_pad)
        bs = jnp.pad(b.reshape(out_dim, p).T, ((0, 0), (0, out_pad - out_dim)))
        return Ws, bs.reshape(1, p * out_pad)

    w1s, b1s = stack_pool(pd["W1"], pd["b1"], h, h_pad)             # [3h, p*h_pad]
    w1u = jnp.pad(w1s[:2 * h], ((0, 2 * h_pad - 2 * h), (0, 0)))    # [2h_pad, p*h_pad]
    w1r = w1s[2 * h:]                                               # [h,  p*h_pad]

    w2s, b2s = stack_pool(pd["W2"], pd["b2"], h, h_pad)             # [h, p*h_pad]
    w2s = jnp.pad(w2s, ((0, h_pad - h), (0, 0)))                    # [h_pad, p*h_pad]

    w3s, b3s = stack_pool(pd["W3"], pd["b3"], 1, 1)                 # [2h, p]
    w3a = jnp.pad(w3s[:h], ((0, h_pad - h), (0, 0)))                # [h_pad, p] (m1 path)
    w3b = jnp.pad(w3s[h:], ((0, h_pad - h), (0, 0)))                # [h_pad, p] (m2 path)

    return dict(
        # f32 host/XLA path: the M=1 dots hoisted out of the kernel.
        Wmlp=pd["Wmlp"].astype(jnp.float32),
        bmlp=pd["bmlp"].astype(jnp.float32),
        W1r=w1r.astype(jnp.float32),
        b1=b1s.astype(jnp.float32),
        # bf16 MXU weights used inside the kernel (f32 accumulation).
        W1u=w1u.astype(compute_dtype),
        W2=w2s.astype(compute_dtype),
        b2=b2s.astype(jnp.float32),
        W3a=w3a.astype(compute_dtype),
        W3b=w3b.astype(compute_dtype),
        b3=b3s.astype(jnp.float32),
    )


def fuse_start_end_hmn(ks, ke):
    """Concatenate start/end layer-1 weights along N so u streams the MXU once."""
    return dict(
        w1cat=jnp.concatenate([ks["W1u"], ke["W1u"]], axis=1),   # [2h_pad, 2*p*h_pad]
        w2s=ks["W2"], b2s=ks["b2"], w3as=ks["W3a"], w3bs=ks["W3b"], b3s=ks["b3"],
        w2e=ke["W2"], b2e=ke["b2"], w3ae=ke["W3a"], w3be=ke["W3b"], b3e=ke["b3"],
    )


def _hmn_layer1_bias(rinput, ks, ke):
    """Hoisted, f32: bias1 = (rinput @ Wmlp^T + bmlp) @ W1_r + b1, for both HMNs.

    rinput: [b, 5h]  ->  [b, 1, 2*p*h_pad]
    """
    def one(k):
        r = rinput @ k["Wmlp"].T + k["bmlp"]        # [b, h]
        return r @ k["W1r"] + k["b1"]               # [b, p*h_pad]
    return jnp.concatenate([one(ks), one(ke)], axis=-1)[:, None, :]


def init_gru_params(key, h):
    ks = jax.random.split(key, 4)
    s = 0.1
    Wih = jax.random.normal(ks[0], (3 * h, 4 * h)) * s
    Whh = jax.random.normal(ks[1], (3 * h, h)) * s
    bih = jax.random.normal(ks[2], (3 * h,)) * s
    bhh = jax.random.normal(ks[3], (3 * h,)) * s
    return (Wih, Whh, bih, bhh)


def gru_cell(x, h_prev, Wih, Whh, bih, bhh):
    """torch.nn.GRUCell semantics (plain JAX glue; tiny [b,4h] matmuls)."""
    gi = x @ Wih.T + bih
    gh = h_prev @ Whh.T + bhh
    i_r, i_z, i_n = jnp.split(gi, 3, axis=-1)
    h_r, h_z, h_n = jnp.split(gh, 3, axis=-1)
    r = jax.nn.sigmoid(i_r + h_r)
    z = jax.nn.sigmoid(i_z + h_z)
    n = jnp.tanh(i_n + r * h_n)
    return (1.0 - z) * n + z * h_prev


# ----------------------------------------------------------------------------
# DynamicDecoder forward (single jit over all decoder iterations; no
# per-iteration host sync).
# ----------------------------------------------------------------------------
@functools.partial(jax.jit, static_argnames=("max_iter", "pool", "hidden", "lane"))
def _decoder_iters(info, w, *, max_iter, pool, hidden, lane):
    b, m, two_h = info.shape
    h_pad = _round_up(hidden, lane)
    barange = jnp.arange(b)

    # Pad the dominant HBM tensor once (lane-aligned 2*h_pad) and cast to bf16;
    # it is reused by every decoder iteration.
    info_pad = jnp.pad(info, ((0, 0), (0, 0),
                              (0, 2 * h_pad - two_h))).astype(jnp.bfloat16)

    hidden_state = jnp.zeros((b, hidden), jnp.float32)
    start = jnp.zeros((b,), jnp.int32)
    end = jnp.ones((b,), jnp.int32)
    done = jnp.zeros((), jnp.bool_)

    s_all, e_all, conv_all = [], [], []
    # TODO(synk): longer-term, fold these max_iter iterations into the kernel as
    # an "arbitrary" grid axis so u/weights stay VMEM-resident across iterations
    # (argmax/gather/GRU are tiny and could run in-kernel).
    for _ in range(max_iter):
        # NOTE: the original PyTorch get_ustart_uend indexes BOTH us and ue with
        # startidx; reproduced exactly (do not "fix" on one side only).
        ustart = info[barange, start]
        uend = info[barange, start]
        rinput = jnp.concatenate([ustart, uend, hidden_state], axis=-1)  # [b, 5h] f32

        bias_cat = _hmn_layer1_bias(rinput, w["hmn_start"], w["hmn_end"])

        s_sc, e_sc = hmn_scores_fused(info_pad, bias_cat, w["fused"],
                                      pool_size=pool, hidden=hidden, lane=lane)
        s_all.append(s_sc)
        e_all.append(e_sc)

        new_start = jnp.argmax(s_sc, axis=-1).astype(jnp.int32)
        new_end = jnp.argmax(e_sc, axis=-1).astype(jnp.int32)
        conv = jnp.all((start == new_start) & (end == new_end))
        conv_all.append(done | conv)

        # Reproduce the PyTorch early break on-device: once converged, freeze
        # (start, end, hidden).  The host truncates all_scores afterwards.
        upd = jnp.logical_not(done | conv)
        us2 = info[barange, new_start]
        ue2 = info[barange, new_start]   # PyTorch bug reproduced (startidx twice)
        new_hidden = gru_cell(jnp.concatenate([us2, ue2], axis=1), hidden_state,
                              *w["gru"])
        hidden_state = jnp.where(upd, new_hidden, hidden_state)
        start = jnp.where(upd, new_start, start)
        end = jnp.where(upd, new_end, end)
        done = done | conv

    return start, end, jnp.stack(s_all), jnp.stack(e_all), jnp.stack(conv_all)


def dynamic_decoder_forward(info, params, max_iter=4):
    """info: [b, m, 2h] -> (start [b], end [b], all_scores list of [s, e])."""
    w = dict(hmn_start=params["hmn_start"], hmn_end=params["hmn_end"],
             fused=params["fused"], gru=params["gru"])
    start, end, s_all, e_all, conv = _decoder_iters(
        info, w, max_iter=max_iter, pool=params["pool_size"],
        hidden=params["hidden_size"], lane=params["lane"])

    # Single device->host read for the whole decode (replaces the per-iteration
    # sync); truncate all_scores exactly where the PyTorch loop would break.
    conv_host = jax.device_get(conv)
    n_iters = max_iter
    for i in range(max_iter):
        if bool(conv_host[i]):
            n_iters = i + 1
            break
    all_scores = [[s_all[i], e_all[i]] for i in range(n_iters)]
    return start, end, all_scores


# ----------------------------------------------------------------------------
# Pure-JAX f32 reference for the HMN (PyTorch-layout weights) used for a check.
# ----------------------------------------------------------------------------
def hmn_ref(u, hi, preus, preue, pd, pool):
    h = pd["bmlp"].shape[0]
    rinput = jnp.concatenate([preus, preue, hi], axis=-1)
    r = rinput @ pd["Wmlp"].T + pd["bmlp"]
    r = jnp.broadcast_to(r[:, None, :], (u.shape[0], u.shape[1], h))
    r_u = jnp.concatenate([u, r], axis=-1)

    def maxout(x, W, b, out):
        y = x @ W.T + b
        y = y.reshape(x.shape[:-1] + (out, pool))
        return y.max(-1)

    m1 = maxout(r_u, pd["W1"], pd["b1"], h)
    m2 = maxout(m1, pd["W2"], pd["b2"], h)
    m3 = maxout(jnp.concatenate([m1, m2], -1), pd["W3"], pd["b3"], 1)
    return m3[..., 0]


# ----------------------------------------------------------------------------
if __name__ == "__main__":
    # Small shapes consistent with the module: batch=2, doclen=8, hidden=32.
    B, M, H = 2, 8, 32
    POOL = 5
    # Lane alignment for pool slices / MXU K-N dims; 128 everywhere. At
    # production hidden sizes use 256 on v6e/v7x (2x256x256 MXU), 128 on v5e.
    LANE = 128
    MAX_ITER = 4

    root = jax.random.PRNGKey(0)
    k_info, k_hs, k_he, k_gru = jax.random.split(root, 4)

    info = jax.random.normal(k_info, (B, M, 2 * H), dtype=jnp.float32)

    hmn_start_raw = init_hmn_params(k_hs, H, POOL)
    hmn_end_raw = init_hmn_params(k_he, H, POOL)
    ks = hmn_to_kernel_layout(hmn_start_raw, H, POOL, lane=LANE)
    ke = hmn_to_kernel_layout(hmn_end_raw, H, POOL, lane=LANE)

    params = dict(
        hidden_size=H, pool_size=POOL, lane=LANE,
        hmn_start=ks, hmn_end=ke,
        fused=fuse_start_end_hmn(ks, ke),
        gru=init_gru_params(k_gru, H),
    )

    # Sanity check: fused bf16 Pallas HMN kernel vs pure-JAX f32 reference at
    # iteration-0 inputs.  bf16 matmul inputs loosen the tolerance slightly.
    H_PAD = _round_up(H, LANE)
    hidden0 = jnp.zeros((B, H), jnp.float32)
    barange = jnp.arange(B)
    start0 = jnp.zeros((B,), jnp.int32)
    us0 = info[barange, start0]
    ue0 = info[barange, start0]
    rinput0 = jnp.concatenate([us0, ue0, hidden0], axis=-1)           # [B, 5H]
    bias0 = _hmn_layer1_bias(rinput0, ks, ke)                         # [B,1,2*p*H_PAD]
    info_pad0 = jnp.pad(info, ((0, 0), (0, 0),
                               (0, 2 * H_PAD - 2 * H))).astype(jnp.bfloat16)

    got_s, got_e = hmn_scores_fused(info_pad0, bias0, params["fused"],
                                    pool_size=POOL, hidden=H, lane=LANE)
    want_s = hmn_ref(info, hidden0, us0, ue0, hmn_start_raw, POOL)
    want_e = hmn_ref(info, hidden0, us0, ue0, hmn_end_raw, POOL)
    assert jnp.allclose(got_s, want_s, atol=5e-2, rtol=5e-2), "start HMN mismatch"
    assert jnp.allclose(got_e, want_e, atol=5e-2, rtol=5e-2), "end HMN mismatch"

    start, end, all_scores = dynamic_decoder_forward(info, params, MAX_ITER)
    jax.block_until_ready((start, end, all_scores))

    print("KERNEL_OK")
</pallas_src>

<mosaic_0001>
module attributes {stable_mosaic.version = 11 : i64} {
  func.func @_probe_kernel(%arg0: i32, %arg1: memref<8x128xf32, #tpu.memory_space<vmem>>, %arg2: memref<8x128xf32, #tpu.memory_space<vmem>>) attributes {dimension_semantics = [#tpu.dimension_semantics<arbitrary>], iteration_bounds = array<i64: 2>, scalar_prefetch = 0 : i64, scratch_operands = 0 : i64, tpu.core_type = #tpu.core_type<tc>, window_params = [{pipeline_mode = #tpu.pipeline_mode<synchronous>, transform_indices = @transform_0, window_bounds = array<i64: 8, 128>}, {transform_indices = @transform_1, window_bounds = array<i64: 8, 128>}]} {
    %c0 = arith.constant 0 : index
    %c0_0 = arith.constant 0 : index
    %0 = vector.load %arg1[%c0, %c0_0] : memref<8x128xf32, #tpu.memory_space<vmem>>, vector<8x128xf32>
    %cst = arith.constant 1.000000e+00 : f32
    %1 = vector.broadcast %cst : f32 to vector<8x128xf32>
    %2 = arith.addf %0, %1 : vector<8x128xf32>
    %c0_1 = arith.constant 0 : index
    %c0_2 = arith.constant 0 : index
    %3 = vector.load %arg2[%c0_1, %c0_2] : memref<8x128xf32, #tpu.memory_space<vmem>>, vector<8x128xf32>
    tpu.vector_store %arg2[%c0_1, %c0_2], %2 {strides = array<i32>} : memref<8x128xf32, #tpu.memory_space<vmem>>, vector<8x128xf32>,
    return
  }
  func.func @transform_0(%arg0: i32) -> (i32, i32) {
    %c0_i32 = arith.constant 0 : i32
    %c0_i32_0 = arith.constant 0 : i32
    %c0_i32_1 = arith.constant 0 : i32
    return %c0_i32, %c0_i32_0 : i32, i32
  }
  func.func @transform_1(%arg0: i32) -> (i32, i32) {
    %c0_i32 = arith.constant 0 : i32
    %c0_i32_0 = arith.constant 0 : i32
    return %arg0, %c0_i32 : i32, i32
  }
}

module attributes {stable_mosaic.version = 11 : i64} {
  func.func @_hmn_fused_kernel(%arg0: i32, %arg1: i32, %arg2: memref<1x1x1280xf32, #tpu.memory_space<vmem>>, %arg3: memref<1x8x256xbf16, #tpu.memory_space<vmem>>, %arg4: memref<256x1280xbf16, #tpu.memory_space<vmem>>, %arg5: memref<128x640xbf16, #tpu.memory_space<vmem>>, %arg6: memref<1x640xf32, #tpu.memory_space<vmem>>, %arg7: memref<128x5xbf16, #tpu.memory_space<vmem>>, %arg8: memref<128x5xbf16, #tpu.memory_space<vmem>>, %arg9: memref<1x5xf32, #tpu.memory_space<vmem>>, %arg10: memref<128x640xbf16, #tpu.memory_space<vmem>>, %arg11: memref<1x640xf32, #tpu.memory_space<vmem>>, %arg12: memref<128x5xbf16, #tpu.memory_space<vmem>>, %arg13: memref<128x5xbf16, #tpu.memory_space<vmem>>, %arg14: memref<1x5xf32, #tpu.memory_space<vmem>>, %arg15: memref<1x1x8xf32, #tpu.memory_space<vmem>>, %arg16: memref<1x1x8xf32, #tpu.memory_space<vmem>>) attributes {dimension_semantics = [#tpu.dimension_semantics<parallel>, #tpu.dimension_semantics<parallel>], iteration_bounds = array<i64: 2, 1>, scalar_prefetch = 0 : i64, scratch_operands = 0 : i64, tpu.core_type = #tpu.core_type<tc>, window_params = [{transform_indices = @transform_0, window_bounds = array<i64: 1, 1, 1280>}, {transform_indices = @transform_1, window_bounds = array<i64: 1, 8, 256>}, {pipeline_mode = #tpu.pipeline_mode<synchronous>, transform_indices = @transform_2, window_bounds = array<i64: 256, 1280>}, {pipeline_mode = #tpu.pipeline_mode<synchronous>, transform_indices = @transform_3, window_bounds = array<i64: 128, 640>}, {pipeline_mode = #tpu.pipeline_mode<synchronous>, transform_indices = @transform_4, window_bounds = array<i64: 1, 640>}, {pipeline_mode = #tpu.pipeline_mode<synchronous>, transform_indices = @transform_5, window_bounds = array<i64: 128, 5>}, {pipeline_mode = #tpu.pipeline_mode<synchronous>, transform_indices = @transform_6, window_bounds = array<i64: 128, 5>}, {pipeline_mode = #tpu.pipeline_mode<synchronous>, transform_indices = @transform_7, window_bounds = array<i64: 1, 5>}, {pipeline_mode = #tpu.pipeline_mode<synchronous>, transform_indices = @transform_8, window_bounds = array<i64: 128, 640>}, {pipeline_mode = #tpu.pipeline_mode<synchronous>, transform_indices = @transform_9, window_bounds = array<i64: 1, 640>}, {pipeline_mode = #tpu.pipeline_mode<synchronous>, transform_indices = @transform_10, window_bounds = array<i64: 128, 5>}, {pipeline_mode = #tpu.pipeline_mode<synchronous>, transform_indices = @transform_11, window_bounds = array<i64: 128, 5>}, {pipeline_mode = #tpu.pipeline_mode<synchronous>, transform_indices = @transform_12, window_bounds = array<i64: 1, 5>}, {transform_indices = @transform_13, window_bounds = array<i64: 1, 1, 8>}, {transform_indices = @transform_14, window_bounds = array<i64: 1, 1, 8>}]} {
    %c0 = arith.constant 0 : index
    %c0_0 = arith.constant 0 : index
    %c0_1 = arith.constant 0 : index
    %0 = vector.load %arg3[%c0, %c0_0, %c0_1] : memref<1x8x256xbf16, #tpu.memory_space<vmem>>, vector<1x8x256xbf16>
    %1 = vector.shape_cast %0 : vector<1x8x256xbf16> to vector<8x256xbf16>
    %c0_2 = arith.constant 0 : index
    %c0_3 = arith.constant 0 : index
    %c0_4 = arith.constant 0 : index
    %2 = vector.load %arg2[%c0_2, %c0_3, %c0_4] : memref<1x1x1280xf32, #tpu.memory_space<vmem>>, vector<1x1x1280xf32>
    %3 = vector.shape_cast %2 : vector<1x1x1280xf32> to vector<1x1280xf32>
    %c0_5 = arith.constant 0 : index
    %c0_6 = arith.constant 0 : index
    %4 = vector.load %arg4[%c0_5, %c0_6] : memref<256x1280xbf16, #tpu.memory_space<vmem>>, vector<256x1280xbf16>
    %cst = arith.constant dense<0.000000e+00> : vector<8x1280xf32>
    %5 = tpu.matmul %1, %4, %cst {dimension_numbers = #tpu.dot_dimension_numbers<[1], [0], [0], [1], [0, 0, 1, 1], [], []>} : vector<8x256xbf16>, vector<256x1280xbf16>, vector<8x1280xf32> -> vector<8x1280xf32>
    %6 = vector.broadcast %3 : vector<1x1280xf32> to vector<8x1280xf32>
    %7 = arith.addf %5, %6 : vector<8x1280xf32>
    %8 = vector.extract_strided_slice %7 {offsets = [0, 0], sizes = [8, 640], strides = [1, 1]} : vector<8x1280xf32> to vector<8x640xf32>
    %9 = vector.extract_strided_slice %8 {offsets = [0, 0], sizes = [8, 128], strides = [1, 1]} : vector<8x640xf32> to vector<8x128xf32>
    %10 = vector.extract_strided_slice %8 {offsets = [0, 128], sizes = [8, 128], strides = [1, 1]} : vector<8x640xf32> to vector<8x128xf32>
    %11 = arith.maximumf %9, %10 : vector<8x128xf32>
    %12 = vector.extract_strided_slice %8 {offsets = [0, 256], sizes = [8, 128], strides = [1, 1]} : vector<8x640xf32> to vector<8x128xf32>
    %13 = arith.maximumf %11, %12 : vector<8x128xf32>
    %14 = vector.extract_strided_slice %8 {offsets = [0, 384], sizes = [8, 128], strides = [1, 1]} : vector<8x640xf32> to vector<8x128xf32>
    %15 = arith.maximumf %13, %14 : vector<8x128xf32>
    %16 = vector.extract_strided_slice %8 {offsets = [0, 512], sizes = [8, 128], strides = [1, 1]} : vector<8x640xf32> to vector<8x128xf32>
    %17 = arith.maximumf %15, %16 : vector<8x128xf32>
    %18 = arith.truncf %17 : vector<8x128xf32> to vector<8x128xbf16>
    %c0_7 = arith.constant 0 : index
    %c0_8 = arith.constant 0 : index
    %19 = vector.load %arg5[%c0_7, %c0_8] : memref<128x640xbf16, #tpu.memory_space<vmem>>, vector<128x640xbf16>
    %cst_9 = arith.constant dense<0.000000e+00> : vector<8x640xf32>
    %20 = tpu.matmul %18, %19, %cst_9 {dimension_numbers = #tpu.dot_dimension_numbers<[1], [0], [0], [1], [0, 0, 1, 1], [], []>} : vector<8x128xbf16>, vector<128x640xbf16>, vector<8x640xf32> -> vector<8x640xf32>
    %c0_10 = arith.constant 0 : index
    %c0_11 = arith.constant 0 : index
    %21 = vector.load %arg6[%c0_10, %c0_11] : memref<1x640xf32, #tpu.memory_space<vmem>>, vector<1x640xf32>
    %22 = vector.broadcast %21 : vector<1x640xf32> to vector<8x640xf32>
    %23 = arith.addf %20, %22 : vector<8x640xf32>
    %24 = vector.extract_strided_slice %23 {offsets = [0, 0], sizes = [8, 128], strides = [1, 1]} : vector<8x640xf32> to vector<8x128xf32>
    %25 = vector.extract_strided_slice %23 {offsets = [0, 128], sizes = [8, 128], strides = [1, 1]} : vector<8x640xf32> to vector<8x128xf32>
    %26 = arith.maximumf %24, %25 : vector<8x128xf32>
    %27 = vector.extract_strided_slice %23 {offsets = [0, 256], sizes = [8, 128], strides = [1, 1]} : vector<8x640xf32> to vector<8x128xf32>
    %28 = arith.maximumf %26, %27 : vector<8x128xf32>
    %29 = vector.extract_strided_slice %23 {offsets = [0, 384], sizes = [8, 128], strides = [1, 1]} : vector<8x640xf32> to vector<8x128xf32>
    %30 = arith.maximumf %28, %29 : vector<8x128xf32>
    %31 = vector.extract_strided_slice %23 {offsets = [0, 512], sizes = [8, 128], strides = [1, 1]} : vector<8x640xf32> to vector<8x128xf32>
    %32 = arith.maximumf %30, %31 : vector<8x128xf32>
    %c0_12 = arith.constant 0 : index
    %c0_13 = arith.constant 0 : index
    %33 = vector.load %arg7[%c0_12, %c0_13] : memref<128x5xbf16, #tpu.memory_space<vmem>>, vector<128x5xbf16>
    %cst_14 = arith.constant dense<0.000000e+00> : vector<8x5xf32>
    %34 = tpu.matmul %18, %33, %cst_14 {dimension_numbers = #tpu.dot_dimension_numbers<[1], [0], [0], [1], [0, 0, 1, 1], [], []>} : vector<8x128xbf16>, vector<128x5xbf16>, vector<8x5xf32> -> vector<8x5xf32>
    %35 = arith.truncf %32 : vector<8x128xf32> to vector<8x128xbf16>
    %c0_15 = arith.constant 0 : index
    %c0_16 = arith.constant 0 : index
    %36 = vector.load %arg8[%c0_15, %c0_16] : memref<128x5xbf16, #tpu.memory_space<vmem>>, vector<128x5xbf16>
    %cst_17 = arith.constant dense<0.000000e+00> : vector<8x5xf32>
    %37 = tpu.matmul %35, %36, %cst_17 {dimension_numbers = #tpu.dot_dimension_numbers<[1], [0], [0], [1], [0, 0, 1, 1], [], []>} : vector<8x128xbf16>, vector<128x5xbf16>, vector<8x5xf32> -> vector<8x5xf32>
    %38 = arith.addf %34, %37 : vector<8x5xf32>
    %c0_18 = arith.constant 0 : index
    %c0_19 = arith.constant 0 : index
    %39 = vector.load %arg9[%c0_18, %c0_19] : memref<1x5xf32, #tpu.memory_space<vmem>>, vector<1x5xf32>
    %40 = vector.broadcast %39 : vector<1x5xf32> to vector<8x5xf32>
    %41 = arith.addf %38, %40 : vector<8x5xf32>
    %cst_20 = arith.constant dense<0xFF800000> : vector<8xf32>
    %42 = vector.multi_reduction <maximumf>, %41, %cst_20 [1] : vector<8x5xf32> to vector<8xf32>
    %43 = vector.shape_cast %42 : vector<8xf32> to vector<1x1x8xf32>
    %c0_21 = arith.constant 0 : index
    %c0_22 = arith.constant 0 : index
    %c0_23 = arith.constant 0 : index
    %44 = vector.load %arg15[%c0_21, %c0_22, %c0_23] : memref<1x1x8xf32, #tpu.memory_space<vmem>>, vector<1x1x8xf32>
    tpu.vector_store %arg15[%c0_21, %c0_22, %c0_23], %43 {strides = array<i32>} : memref<1x1x8xf32, #tpu.memory_space<vmem>>, vector<1x1x8xf32>,
    %45 = vector.extract_strided_slice %7 {offsets = [0, 640], sizes = [8, 640], strides = [1, 1]} : vector<8x1280xf32> to vector<8x640xf32>
    %46 = vector.extract_strided_slice %45 {offsets = [0, 0], sizes = [8, 128], strides = [1, 1]} : vector<8x640xf32> to vector<8x128xf32>
    %47 = vector.extract_strided_slice %45 {offsets = [0, 128], sizes = [8, 128], strides = [1, 1]} : vector<8x640xf32> to vector<8x128xf32>
    %48 = arith.maximumf %46, %47 : vector<8x128xf32>
    %49 = vector.extract_strided_slice %45 {offsets = [0, 256], sizes = [8, 128], strides = [1, 1]} : vector<8x640xf32> to vector<8x128xf32>
    %50 = arith.maximumf %48, %49 : vector<8x128xf32>
    %51 = vector.extract_strided_slice %45 {offsets = [0, 384], sizes = [8, 128], strides = [1, 1]} : vector<8x640xf32> to vector<8x128xf32>
    %52 = arith.maximumf %50, %51 : vector<8x128xf32>
    %53 = vector.extract_strided_slice %45 {offsets = [0, 512], sizes = [8, 128], strides = [1, 1]} : vector<8x640xf32> to vector<8x128xf32>
    %54 = arith.maximumf %52, %53 : vector<8x128xf32>
    %55 = arith.truncf %54 : vector<8x128xf32> to vector<8x128xbf16>
    %c0_24 = arith.constant 0 : index
    %c0_25 = arith.constant 0 : index
    %56 = vector.load %arg10[%c0_24, %c0_25] : memref<128x640xbf16, #tpu.memory_space<vmem>>, vector<128x640xbf16>
    %cst_26 = arith.constant dense<0.000000e+00> : vector<8x640xf32>
    %57 = tpu.matmul %55, %56, %cst_26 {dimension_numbers = #tpu.dot_dimension_numbers<[1], [0], [0], [1], [0, 0, 1, 1], [], []>} : vector<8x128xbf16>, vector<128x640xbf16>, vector<8x640xf32> -> vector<8x640xf32>
    %c0_27 = arith.constant 0 : index
    %c0_28 = arith.constant 0 : index
    %58 = vector.load %arg11[%c0_27, %c0_28] : memref<1x640xf32, #tpu.memory_space<vmem>>, vector<1x640xf32>
    %59 = vector.broadcast %58 : vector<1x640xf32> to vector<8x640xf32>
    %60 = arith.addf %57, %59 : vector<8x640xf32>
    %61 = vector.extract_strided_slice %60 {offsets = [0, 0], sizes = [8, 128], strides = [1, 1]} : vector<8x640xf32> to vector<8x128xf32>
    %62 = vector.extract_strided_slice %60 {offsets = [0, 128], sizes = [8, 128], strides = [1, 1]} : vector<8x640xf32> to vector<8x128xf32>
    %63 = arith.maximumf %61, %62 : vector<8x128xf32>
    %64 = vector.extract_strided_slice %60 {offsets = [0, 256], sizes = [8, 128], strides = [1, 1]} : vector<8x640xf32> to vector<8x128xf32>
    %65 = arith.maximumf %63, %64 : vector<8x128xf32>
    %66 = vector.extract_strided_slice %60 {offsets = [0, 384], sizes = [8, 128], strides = [1, 1]} : vector<8x640xf32> to vector<8x128xf32>
    %67 = arith.maximumf %65, %66 : vector<8x128xf32>
    %68 = vector.extract_strided_slice %60 {offsets = [0, 512], sizes = [8, 128], strides = [1, 1]} : vector<8x640xf32> to vector<8x128xf32>
    %69 = arith.maximumf %67, %68 : vector<8x128xf32>
    %c0_29 = arith.constant 0 : index
    %c0_30 = arith.constant 0 : index
    %70 = vector.load %arg12[%c0_29, %c0_30] : memref<128x5xbf16, #tpu.memory_space<vmem>>, vector<128x5xbf16>
    %cst_31 = arith.constant dense<0.000000e+00> : vector<8x5xf32>
    %71 = tpu.matmul %55, %70, %cst_31 {dimension_numbers = #tpu.dot_dimension_numbers<[1], [0], [0], [1], [0, 0, 1, 1], [], []>} : vector<8x128xbf16>, vector<128x5xbf16>, vector<8x5xf32> -> vector<8x5xf32>
    %72 = arith.truncf %69 : vector<8x128xf32> to vector<8x128xbf16>
    %c0_32 = arith.constant 0 : index
    %c0_33 = arith.constant 0 : index
    %73 = vector.load %arg13[%c0_32, %c0_33] : memref<128x5xbf16, #tpu.memory_space<vmem>>, vector<128x5xbf16>
    %cst_34 = arith.constant dense<0.000000e+00> : vector<8x5xf32>
    %74 = tpu.matmul %72, %73, %cst_34 {dimension_numbers = #tpu.dot_dimension_numbers<[1], [0], [0], [1], [0, 0, 1, 1], [], []>} : vector<8x128xbf16>, vector<128x5xbf16>, vector<8x5xf32> -> vector<8x5xf32>
    %75 = arith.addf %71, %74 : vector<8x5xf32>
    %c0_35 = arith.constant 0 : index
    %c0_36 = arith.constant 0 : index
    %76 = vector.load %arg14[%c0_35, %c0_36] : memref<1x5xf32, #tpu.memory_space<vmem>>, vector<1x5xf32>
    %77 = vector.broadcast %76 : vector<1x5xf32> to vector<8x5xf32>
    %78 = arith.addf %75, %77 : vector<8x5xf32>
    %cst_37 = arith.constant dense<0xFF800000> : vector<8xf32>
    %79 = vector.multi_reduction <maximumf>, %78, %cst_37 [1] : vector<8x5xf32> to vector<8xf32>
    %80 = vector.shape_cast %79 : vector<8xf32> to vector<1x1x8xf32>
    %c0_38 = arith.constant 0 : index
    %c0_39 = arith.constant 0 : index
    %c0_40 = arith.constant 0 : index
    %81 = vector.load %arg16[%c0_38, %c0_39, %c0_40] : memref<1x1x8xf32, #tpu.memory_space<vmem>>, vector<1x1x8xf32>
    tpu.vector_store %arg16[%c0_38, %c0_39, %c0_40], %80 {strides = array<i32>} : memref<1x1x8xf32, #tpu.memory_space<vmem>>, vector<1x1x8xf32>,
    return
  }
  func.func @transform_0(%arg0: i32, %arg1: i32) -> (i32, i32, i32) {
    %c0_i32 = arith.constant 0 : i32
    %c0_i32_0 = arith.constant 0 : i32
    %c0_i32_1 = arith.constant 0 : i32
    return %arg0, %c0_i32, %c0_i32_0 : i32, i32, i32
  }
  func.func @transform_1(%arg0: i32, %arg1: i32) -> (i32, i32, i32) {
    %c0_i32 = arith.constant 0 : i32
    %c0_i32_0 = arith.constant 0 : i32
    return %arg0, %arg1, %c0_i32 : i32, i32, i32
  }
  func.func @transform_2(%arg0: i32, %arg1: i32) -> (i32, i32) {
    %c0_i32 = arith.constant 0 : i32
    %c0_i32_0 = arith.constant 0 : i32
    %c0_i32_1 = arith.constant 0 : i32
    return %c0_i32, %c0_i32_0 : i32, i32
  }
  func.func @transform_3(%arg0: i32, %arg1: i32) -> (i32, i32) {
    %c0_i32 = arith.constant 0 : i32
    %c0_i32_0 = arith.constant 0 : i32
    %c0_i32_1 = arith.constant 0 : i32
    return %c0_i32, %c0_i32_0 : i32, i32
  }
  func.func @transform_4(%arg0: i32, %arg1: i32) -> (i32, i32) {
    %c0_i32 = arith.constant 0 : i32
    %c0_i32_0 = arith.constant 0 : i32
    %c0_i32_1 = arith.constant 0 : i32
    return %c0_i32, %c0_i32_0 : i32, i32
  }
  func.func @transform_5(%arg0: i32, %arg1: i32) -> (i32, i32) {
    %c0_i32 = arith.constant 0 : i32
    %c0_i32_0 = arith.constant 0 : i32
    %c0_i32_1 = arith.constant 0 : i32
    return %c0_i32, %c0_i32_0 : i32, i32
  }
  func.func @transform_6(%arg0: i32, %arg1: i32) -> (i32, i32) {
    %c0_i32 = arith.constant 0 : i32
    %c0_i32_0 = arith.constant 0 : i32
    %c0_i32_1 = arith.constant 0 : i32
    return %c0_i32, %c0_i32_0 : i32, i32
  }
  func.func @transform_7(%arg0: i32, %arg1: i32) -> (i32, i32) {
    %c0_i32 = arith.constant 0 : i32
    %c0_i32_0 = arith.constant 0 : i32
    %c0_i32_1 = arith.constant 0 : i32
    return %c0_i32, %c0_i32_0 : i32, i32
  }
  func.func @transform_8(%arg0: i32, %arg1: i32) -> (i32, i32) {
    %c0_i32 = arith.constant 0 : i32
    %c0_i32_0 = arith.constant 0 : i32
    %c0_i32_1 = arith.constant 0 : i32
    return %c0_i32, %c0_i32_0 : i32, i32
  }
  func.func @transform_9(%arg0: i32, %arg1: i32) -> (i32, i32) {
    %c0_i32 = arith.constant 0 : i32
    %c0_i32_0 = arith.constant 0 : i32
    %c0_i32_1 = arith.constant 0 : i32
    return %c0_i32, %c0_i32_0 : i32, i32
  }
  func.func @transform_10(%arg0: i32, %arg1: i32) -> (i32, i32) {
    %c0_i32 = arith.constant 0 : i32
    %c0_i32_0 = arith.constant 0 : i32
    %c0_i32_1 = arith.constant 0 : i32
    return %c0_i32, %c0_i32_0 : i32, i32
  }
  func.func @transform_11(%arg0: i32, %arg1: i32) -> (i32, i32) {
    %c0_i32 = arith.constant 0 : i32
    %c0_i32_0 = arith.constant 0 : i32
    %c0_i32_1 = arith.constant 0 : i32
    return %c0_i32, %c0_i32_0 : i32, i32
  }
  func.func @transform_12(%arg0: i32, %arg1: i32) -> (i32, i32) {
    %c0_i32 = arith.constant 0 : i32
    %c0_i32_0 = arith.constant 0 : i32
    %c0_i32_1 = arith.constant 0 : i32
    return %c0_i32, %c0_i32_0 : i32, i32
  }
  func.func @transform_13(%arg0: i32, %arg1: i32) -> (i32, i32, i32) {
    %c0_i32 = arith.constant 0 : i32
    %c0_i32_0 = arith.constant 0 : i32
    return %arg0, %c0_i32, %arg1 : i32, i32, i32
  }
  func.func @transform_14(%arg0: i32, %arg1: i32) -> (i32, i32, i32) {
    %c0_i32 = arith.constant 0 : i32
    %c0_i32_0 = arith.constant 0 : i32
    return %arg0, %c0_i32, %arg1 : i32, i32, i32
  }
}

</mosaic_0001>

<bundles_post_ra>
// kernel: tpu_custom_call.1
= control target key start
LH: loop header
LB: loop body
LE: loop exit
PB: predicated region body
PF: predicated region fallthrough
CT: control target
= control target key end

     0   :  { %6 = vsyncpa [#allocation3], 0  ;;  %s482_s0 = inlined_call_operand.hbm [shape: f32[8,128], index: 0, kind: input, shape index: {}]   ;;  %s483_s1 = inlined_call_operand.hbm [shape: f32[16,128], index: 1, kind: output, shape index: {}]  }
   0x1   :  { %7 = vsyncpa [#allocation4], 0 }
   0x2   :  { %9 = vsyncpa [#allocation4 + $0x1], 0  ;;  %s352_s6 = smov 0   ;;  %s354_s7 = smov 0  }
   0x3   :  { %s356_s8 = smov 0   ;;  %s358_s9 = smov 0  }
   0x4 LB: > { %s373_s10 = sadd.s32 4294967295, %s338_s9   ;;  %s184_s11 = sadd.s32 4294967294, %s338_s9   ;;  %s338_s9 = sphi %s358_s9, %s499_s9   ;;  %s334_s8 = sphi %s356_s8, %s498_s8   ;;  %s330_s7 = sphi %s354_s7, %s497_s7   ;;  %s326_s6 = sphi %s352_s6, %s496_s6  }
   0x5   : > { %s377_s12 = sadd.s32 1, %s338_s9   ;;  %s43_s13 = sadd.s32 1, %s334_s8 }
   0x6   : > { %s40_s14 = ssub.s32 %s338_s9, %s377_s12  ;;  %p53_p0 = scmp.ne.s32.totalorder %s334_s8, %s330_s7 }
   0x7   : > { %p41_p1 = scmp.eq.s32.totalorder %s40_s14, 0  ;;  %p54_p2 = scmp.eq.s32.totalorder %s373_s10, 1 }
   0x8   : > { %p59_p3 = scmp.ne.s32.totalorder %s330_s7, %s326_s6  ;;  %p60_p4 = scmp.eq.s32.totalorder %s184_s11, 1 }
   0x9   : > { %s388_s15 = scalar_select %p41_p1, %s334_s8, %s43_s13  }
   0xa   : > { %p390_p5 = por %p54_p2, %p53_p0  ;;  %p394_p6 = por %p60_p4, %p59_p3 }
   0xb   : > { %p185_p7 = scmp.ge.s32.totalorder %s338_s9, 1  ;;  %p67_p8 = scmp.lt.s32.totalorder %s338_s9, 3 }
   0xc   : > { %s487_s16 = scalar_select %p390_p5, 1, 0 }
   0xd   : > { %s488_s17 = scalar_select %p394_p6, 1, 0 }
   0xe   : > { %p484_p9 = scmp.eq.s32.totalorder %s373_s10, 0  ;;  %p401_p10 = pnand %p185_p7, %p67_p8 }
   0xf   : > { %s340_s19 = smov [#allocation2]   ;;  %s244_s24 = scalar_lea.hbm %s482_s0, 128 }
  0x10   : > { %s489_s18 = scalar_select %p401_p10, 1, 0 }
  0x11   : > { %s80_s20 = sshll.u32 %s340_s19, 4  ;;  %p200_p11 = pneg %p401_p10  ;;  %s81_s20 = int_to_ptr.vmem [resolvable:$true] %s80_s20 }
  0x12   : > { %p245_p13 = scmp.ne.s32.totalorder %s482_s0, %s244_s24  ;;  %p251_p3 = scmp.lt.u32.totalorder %s244_s24, %s482_s0 }
  0x13   : > { %p409_p12 = pnand %p484_p9, %p200_p11 }
  0x15   : > { %p246_p0 = pneg %p409_p12 }
  0x17   : > { %p247_p1 = pnand %p246_p0, %p245_p13 }
  0x19   : > { %p248_p2 = pneg %p247_p1 }
  0x1b   : > { %p253_p4 = pnand %p251_p3, %p248_p2 }
  0x1d   : > { %256 = shalt.err (!%p253_p4)
}
  0x1e   : > { %s257_s29 = scalar_lea.vmem %s81_s20, 128  ;;  %p265_p9 = scmp.lt.s32.totalorder %s81_s20, %s81_s20 }
  0x1f   : > { %p258_p7 = scmp.ne.s32.totalorder %s81_s20, %s257_s29  ;;  %p266_p6 = scmp.lt.s32.totalorder %s257_s29, %s257_s29 }
  0x21   : > { %p260_p8 = pnand %p258_p7, %p246_p0  ;;  %p267_p5 = por %p266_p6, %p265_p9 }
  0x23   : > { %p261_p11 = pneg %p260_p8 }
  0x25   : > { %p268_p10 = pnand %p267_p5, %p261_p11 }
  0x27   : > { %271 = shalt.err (!%p268_p10)
}
  0x28   : > { %203 = dma.hbm_to_vmem [thread:$0]  (!%p409_p12), %s482_s0, 128, %s81_s20, [#allocation3]  }
  0x29   : > { %p491_p13 = scmp.ne.s32.totalorder %s489_s18, 0 }
  0x2a   : > { %p492_p1 = scmp.eq.s32.totalorder (!%p491_p13), %s373_s10, 0 }
  0x2b   : > { %93 = sbr.rel (%p491_p13) target bundleno = 77 (0x4d), region = 24 }
  0x32   : > { %317 = dma.done.wait (%p492_p1), [#allocation3], 128   ;;  %p493_p0 = pmov %p492_p1 }
  0x33   : > { %s105_s3 = sand.u32 1, %s330_s7   ;;  %s191_s13 = sshll.u32 %s373_s10, 7  ;;  %v108_v0 = vld [vmem:[#allocation2] sm:$0xff] }
  0x34   : > { %319 = vsyncadd (%p493_p0), [#allocation3], 4294967168  ;;  %s189_s4 = sshll.u32 %s105_s3, 3  ;;  %v109_v1 = vadd.f32 1.0, %v108_v0  ;;  %s442_s19 = scalar_lea.hbm %s483_s1, %s191_s13 }
  0x35   : > { %s107_s5 = scalar_lea.vmem [#allocation5], %s189_s4  ;;  %s112_s20 = scalar_lea.sflag [#allocation4], %s105_s3 }
  0x36   : > { %s125_s11 = sshll.u32 %s107_s5, 4  ;;  %110 = vst [vmem:[%s107_s5] sm:$0xff] %v109_v1  ;;  %p494_p6 = scmp.ne.s32.totalorder %s487_s16, 0  ;;  %s437_s11 = int_to_ptr.vmem [resolvable:$true] %s125_s11 }
  0x37   : > { %s272_s21 = scalar_lea.vmem %s437_s11, 128  ;;  %s341_s10 = smov [#allocation5]  }
  0x38   : > { %p273_p5 = scmp.ne.s32.totalorder %s437_s11, %s272_s21  ;;  %s276_s22 = sshll.u32 %s341_s10, 4  ;;  %s277_s22 = int_to_ptr.vmem [resolvable:$false] %s276_s22 }
  0x39   : > { %s278_s23 = scalar_lea.vmem %s277_s22, 256  ;;  %p279_p12 = scmp.lt.s32.totalorder %s437_s11, %s277_s22 }
  0x3a   : > { %p274_p9 = pnand %p273_p5, %p494_p6  ;;  %p280_p2 = scmp.lt.s32.totalorder %s278_s23, %s272_s21 }
  0x3c   : > { %p275_p10 = pneg %p274_p9  ;;  %p281_p3 = por %p280_p2, %p279_p12 }
  0x3e   : > { %p282_p4 = pnand %p281_p3, %p275_p10 }
  0x40   : > { %285 = shalt.err (!%p282_p4)
}
  0x41   : > { %s286_s24 = scalar_lea.hbm %s442_s19, 128  ;;  %s290_s27 = scalar_lea.hbm %s483_s1, 256 }
  0x42   : > { %p287_p7 = scmp.ne.s32.totalorder %s442_s19, %s286_s24  ;;  %p291_p13 = scmp.lt.u32.totalorder %s442_s19, %s483_s1 }
  0x43   : > { %p292_p1 = scmp.lt.u32.totalorder %s290_s27, %s286_s24  ;;  %p294_p5 = scmp.lt.u32.totalorder %s286_s24, %s442_s19 }
  0x44   : > { %p288_p8 = pnand %p287_p7, %p494_p6 }
  0x45   : > { %p293_p0 = por %p292_p1, %p291_p13 }
  0x46   : > { %p289_p11 = pneg %p288_p8 }
  0x47   : > { %p295_p9 = por %p294_p5, %p293_p0 }
  0x49   : > { %p296_p10 = pnand %p295_p9, %p289_p11 }
  0x4b   : > { %299 = shalt.err (!%p296_p10)
}
  0x4c   : > { %198 = dma.vmem_to_hbm [thread:$0]  (%p494_p6), %s437_s11, 128, %s442_s19, %s112_s20  }
  0x4d PF: > { %p210_p12 = scmp.ge.s32.totalorder %s338_s9, 2  ;;  %s137_s30 = sand.u32 1, %s326_s6  }
  0x4e   : > { %p495_p2 = scmp.ne.s32.totalorder %s488_s17, 0  ;;  %s138_s2 = scalar_lea.sflag [#allocation4], %s137_s30 }
  0x50   : > { %p205_p3 = pnand %p210_p12, %p495_p2 }
  0x52   : > { %321 = dma.done.wait (!%p205_p3), %s138_s2, 128  }
  0x53   : > { %323 = vsyncadd (!%p205_p3), %s138_s2, 4294967168  ;;  %p12_p4 = scmp.ge.s32.totalorder %s377_s12, 4   ;;  %s496_s6 = smov %s330_s7 }
  0x54   : > { %s497_s7 = smov %s334_s8  ;;  %s498_s8 = smov %s388_s15 }
  0x55   : > { %s499_s9 = smov %s377_s12  ;;  %14 = sbr.rel (!%p12_p4) target bundleno = 4 (0x4), region = 61 }
  0x5c   :  { %143 = vsyncpa [#allocation3], 1 }
  0x5d   :  { %145 = vsyncpa [#allocation3 + $0x1], 1 }
  0x5e   :  { %146 = vsyncpa [#allocation4], 1 }
  0x5f   :  { %148 = vsyncpa [#allocation4 + $0x1], 1 }

// kernel: tpu_custom_call.1
= control target key start
LH: loop header
LB: loop body
LE: loop exit
PB: predicated region body
PF: predicated region fallthrough
CT: control target
= control target key end

     0   :  { %s5830_s0 = inlined_call_operand.hbm [shape: f32[2,1,1280], index: 0, kind: input, shape index: {}]   ;;  %s5831_s1 = inlined_call_operand.hbm [shape: bf16[2,8,256], index: 1, kind: input, shape index: {}]   ;;  %s5832_s2 = inlined_call_operand.hbm [shape: bf16[256,1280], index: 2, kind: input, shape index: {}]   ;;  %s5833_s3 = inlined_call_operand.hbm [shape: bf16[128,640], index: 3, kind: input, shape index: {}]   ;;  %s5834_s4 = inlined_call_operand.hbm [shape: f32[1,640], index: 4, kind: input, shape index: {}]   ;;  %s5835_s5 = inlined_call_operand.hbm [shape: bf16[128,5], index: 5, kind: input, shape index: {}]   ;;  %s5836_s6 = inlined_call_operand.hbm [shape: bf16[128,5], index: 6, kind: input, shape index: {}]   ;;  %s5837_s7 = inlined_call_operand.hbm [shape: f32[1,5], index: 7, kind: input, shape index: {}]   ;;  %s5838_s8 = inlined_call_operand.hbm [shape: bf16[128,640], index: 8, kind: input, shape index: {}]   ;;  %s5839_s9 = inlined_call_operand.hbm [shape: f32[1,640], index: 9, kind: input, shape index: {}]   ;;  %s5840_s10 = inlined_call_operand.hbm [shape: bf16[128,5], index: 10, kind: input, shape index: {}]   ;;  %s5841_s11 = inlined_call_operand.hbm [shape: bf16[128,5], index: 11, kind: input, shape index: {}]   ;;  %s5842_s12 = inlined_call_operand.hbm [shape: f32[1,5], index: 12, kind: input, shape index: {}]   ;;  %s5843_s13 = inlined_call_operand.hbm [shape: f32[2,1,8], index: 13, kind: output, shape index: {0}]   ;;  %s5844_s14 = inlined_call_operand.hbm [shape: f32[2,1,8], index: 14, kind: output, shape index: {1}]  }
   0x1   :  { %5861 = sst [smem:[#allocation40_spill]] %s5830_s0 }
   0x2   :  { %5862 = sst [smem:[#allocation41_spill]] %s5831_s1 }
   0x3   :  { %5863 = sst [smem:[#allocation42_spill]] %s5832_s2 }
   0x4   :  { %5864 = sst [smem:[#allocation43_spill]] %s5833_s3 }
   0x5   :  { %5865 = sst [smem:[#allocation44_spill]] %s5834_s4 }
   0x6   :  { %5866 = sst [smem:[#allocation45_spill]] %s5835_s5 }
   0x7   :  { %5867 = sst [smem:[#allocation46_spill]] %s5836_s6 }
   0x8   :  { %5868 = sst [smem:[#allocation47_spill]] %s5837_s7 }
   0x9   :  { %5869 = sst [smem:[#allocation48_spill]] %s5843_s13 }
   0xa   :  { %5870 = sst [smem:[#allocation49_spill]] %s5844_s14 }
   0xb   :  { %20 = vsyncpa [#allocation3], 0 }
   0xc   :  { %22 = vsyncpa [#allocation3 + $0x1], 0 }
   0xd   :  { %23 = vsyncpa [#allocation6], 0 }
   0xe   :  { %25 = vsyncpa [#allocation6 + $0x1], 0 }
   0xf   :  { %26 = vsyncpa [#allocation9], 0 }
  0x10   :  { %27 = vsyncpa [#allocation12], 0 }
  0x11   :  { %28 = vsyncpa [#allocation15], 0 }
  0x12   :  { %29 = vsyncpa [#allocation18], 0 }
  0x13   :  { %30 = vsyncpa [#allocation21], 0 }
  0x14   :  { %31 = vsyncpa [#allocation4], 0 }
  0x15   :  { %33 = vsyncpa [#allocation4 + $0x1], 0 }
  0x16   :  { %34 = vsyncpa [#allocation25], 0 }
  0x17   :  { %36 = vsyncpa [#allocation25 + $0x1], 0  ;;  %s5161_s29 = smov 0   ;;  %s5163_s30 = smov 0  }
  0x18   :  { %s5165_s15 = smov 0   ;;  %s5167_s16 = smov 0  }
  0x19   :  { %s5169_s17 = smov 0   ;;  %s5171_s18 = smov 0  }
  0x1a LB: > { %5871 = sst [smem:[#allocation36_spill]] %s5040_s29  ;;  %s5192_s19 = sadd.s32 4294967295, %s5060_s18   ;;  %s5060_s18 = sphi %s5171_s18, %s42_s18   ;;  %s5056_s17 = sphi %s5169_s17, %s5925_s17   ;;  %s5052_s16 = sphi %s5167_s16, %s5924_s16   ;;  %s5048_s15 = sphi %s5165_s15, %s5923_s15   ;;  %s5044_s30 = sphi %s5163_s30, %s5922_s30   ;;  %s5040_s29 = sphi %s5161_s29, %s5921_s29  }
  0x1b   : > { %5872 = sst [smem:[#allocation37_spill]] %s5052_s16  ;;  %p3484_p0 = scmp.ge.s32.totalorder %s5060_s18, 1 }
  0x1c   : > { %5873 = sst [smem:[#allocation38_spill]] %s5192_s19  ;;  %p5854_p1 = scmp.eq.s32.totalorder %s5192_s19, 0 }
  0x1d   : > { %p400_p2 = scmp.lt.s32.totalorder %s5060_s18, 3  ;;  %s5062_s21 = smov [#allocation7]  }
  0x1e   : > { %s412_s22 = sshll.u32 %s5062_s21, 4  ;;  %s5063_s24 = smov [#allocation8]   ;;  %s5201_s22 = int_to_ptr.vmem [resolvable:$true] %s412_s22 }
  0x1f   : > { %p5197_p3 = pnand %p3484_p0, %p400_p2  ;;  %s425_s25 = sshll.u32 %s5063_s24, 4  ;;  %s5212_s25 = int_to_ptr.vmem [resolvable:$true] %s425_s25 }
  0x20   : > { %s5877_s2 = sld [smem:[#allocation42_spill]] }
  0x21   : > { %s5874_s20 = scalar_select %p5197_p3, 1, 0 }
  0x22   : > { %p4024_p4 = pneg %p5197_p3 }
  0x23   : > { %5875 = sst [smem:[#allocation39_spill]] %s5874_s20 }
  0x24   : > { %p5208_p6 = pnand %p4024_p4, %p5854_p1 }
  0x26   : > { %s4550_s28 = scalar_lea.hbm %s5877_s2, 20480  ;;  %p5222_p8 = pneg %p5208_p6 }
  0x27   : > { %p4551_p7 = scmp.ne.s32.totalorder %s5877_s2, %s4550_s28  ;;  %p4557_p11 = scmp.lt.u32.totalorder %s4550_s28, %s5877_s2 }
  0x29   : > { %p4553_p9 = pnand %p5222_p8, %p4551_p7 }
  0x2b   : > { %p4554_p10 = pneg %p4553_p9 }
  0x2d   : > { %p4559_p12 = pnand %p4557_p11, %p4554_p10 }
  0x2f   : > { %4562 = shalt.err (!%p4559_p12)
}
  0x30   : > { %s4563_s14 = scalar_lea.vmem %s5201_s22, 20480  ;;  %p4571_p4 = scmp.lt.s32.totalorder %s5201_s22, %s5201_s22 }
  0x31   : > { %p4564_p13 = scmp.ne.s32.totalorder %s5201_s22, %s4563_s14  ;;  %p4572_p5 = scmp.lt.s32.totalorder %s4563_s14, %s4563_s14 }
  0x33   : > { %p4566_p0 = pnand %p4564_p13, %p5222_p8  ;;  %p4573_p7 = por %p4572_p5, %p4571_p4 }
  0x35   : > { %p4567_p2 = pneg %p4566_p0 }
  0x37   : > { %p4574_p9 = pnand %p4573_p7, %p4567_p2 }
  0x39   : > { %4577 = shalt.err (!%p4574_p9)
}
  0x3a   : > { %s5064_s26 = smov 640   ;;  %s5065_s16 = smov 40  }
  0x3b   : > { %4027 = dma.hbm_to_vmem [thread:$0]  (!%p5208_p6), %s5877_s2, 20480, %s5201_s22, [#allocation6], %s5064_s26, %s5064_s26, %s5065_s16  }
  0x3c   : > { %s5879_s3 = sld [smem:[#allocation43_spill]] }
  0x42   : > { %s4578_s20 = scalar_lea.hbm %s5879_s3, 5120 }
  0x43   : > { %p4579_p5 = scmp.ne.s32.totalorder %s5879_s3, %s4578_s20  ;;  %p4585_p12 = scmp.lt.u32.totalorder %s4578_s20, %s5879_s3 }
  0x45   : > { %p4581_p10 = pnand %p4579_p5, %p5222_p8 }
  0x47   : > { %p4582_p11 = pneg %p4581_p10 }
  0x49   : > { %p4587_p13 = pnand %p4585_p12, %p4582_p11 }
  0x4b   : > { %4590 = shalt.err (!%p4587_p13)
}
  0x4c   : > { %s4591_s22 = scalar_lea.vmem %s5212_s25, 5120  ;;  %p4599_p7 = scmp.lt.s32.totalorder %s5212_s25, %s5212_s25 }
  0x4d   : > { %p4592_p0 = scmp.ne.s32.totalorder %s5212_s25, %s4591_s22  ;;  %p4600_p9 = scmp.lt.s32.totalorder %s4591_s22, %s4591_s22 }
  0x4f   : > { %p4594_p2 = pnand %p4592_p0, %p5222_p8  ;;  %p4601_p5 = por %p4600_p9, %p4599_p7 }
  0x51   : > { %p4595_p4 = pneg %p4594_p2 }
  0x53   : > { %p4602_p10 = pnand %p4601_p5, %p4595_p4 }
  0x55   : > { %4605 = shalt.err (!%p4602_p10)
}
  0x56   : > { %s5856_s0 = smov 320   ;;  %s5857_s1 = smov 20  }
  0x57   : > { %4030 = dma.hbm_to_vmem [thread:$0]  (!%p5208_p6), %s5879_s3, 5120, %s5212_s25, [#allocation9], %s5856_s0, %s5856_s0, %s5857_s1  }
  0x58   : > { %s5068_s26 = smov [#allocation11]   ;;  %s5880_s5 = sld [smem:[#allocation45_spill]] }
  0x59   : > { %s449_s16 = sshll.u32 %s5068_s26, 4  ;;  %s450_s16 = int_to_ptr.vmem [resolvable:$true] %s449_s16 }
  0x5e   : > { %s4606_s21 = scalar_lea.hbm %s5880_s5, 1024 }
  0x5f   : > { %p4607_p11 = scmp.ne.s32.totalorder %s5880_s5, %s4606_s21  ;;  %p4613_p0 = scmp.lt.u32.totalorder %s4606_s21, %s5880_s5 }
  0x61   : > { %p4609_p12 = pnand %p4607_p11, %p5222_p8 }
  0x63   : > { %p4610_p13 = pneg %p4609_p12 }
  0x65   : > { %p4615_p2 = pnand %p4613_p0, %p4610_p13 }
  0x67   : > { %4618 = shalt.err (!%p4615_p2)
}
  0x68   : > { %s4619_s25 = scalar_lea.vmem %s450_s16, 1024  ;;  %p4627_p5 = scmp.lt.s32.totalorder %s450_s16, %s450_s16 }
  0x69   : > { %p4620_p4 = scmp.ne.s32.totalorder %s450_s16, %s4619_s25  ;;  %p4628_p10 = scmp.lt.s32.totalorder %s4619_s25, %s4619_s25 }
  0x6b   : > { %p4622_p7 = pnand %p4620_p4, %p5222_p8  ;;  %p4629_p1 = por %p4628_p10, %p4627_p5 }
  0x6d   : > { %p4623_p9 = pneg %p4622_p7 }
  0x6f   : > { %p4630_p3 = pnand %p4629_p1, %p4623_p9 }
  0x71   : > { %4633 = shalt.err (!%p4630_p3)
}
  0x72   : > { %s5858_s19 = smov 64   ;;  %s5070_s20 = smov 4  }
  0x73   : > { %4036 = dma.hbm_to_vmem [thread:$0]  (!%p5208_p6), %s5880_s5, 1024, %s450_s16, [#allocation12], %s5858_s19, %s5858_s19, %s5070_s20  }
  0x74   : > { %s5071_s27 = smov [#allocation14]   ;;  %s5072_s21 = smov [#allocation17]  }
  0x75   : > { %s476_s28 = sshll.u32 %s5071_s27, 4  ;;  %s500_s24 = sshll.u32 %s5072_s21, 4  ;;  %s477_s28 = int_to_ptr.vmem [resolvable:$true] %s476_s28  ;;  %s501_s24 = int_to_ptr.vmem [resolvable:$true] %s500_s24 }
  0x76   : > { %s5881_s7 = sld [smem:[#allocation47_spill]] }
  0x7c   : > { %s4634_s25 = scalar_lea.hbm %s5881_s7, 16 }
  0x7d   : > { %p4635_p1 = scmp.ne.s32.totalorder %s5881_s7, %s4634_s25  ;;  %p4641_p12 = scmp.lt.u32.totalorder %s4634_s25, %s5881_s7 }
  0x7f   : > { %p4637_p3 = pnand %p4635_p1, %p5222_p8 }
  0x81   : > { %p4638_p11 = pneg %p4637_p3 }
  0x83   : > { %p4643_p13 = pnand %p4641_p12, %p4638_p11 }
  0x85   : > { %4646 = shalt.err (!%p4643_p13)
}
  0x86   : > { %s4647_s16 = scalar_lea.vmem %s477_s28, 16  ;;  %s4654_s2 = scalar_lea.vmem %s477_s28, 32 }
  0x87   : > { %p4648_p0 = scmp.ne.s32.totalorder %s477_s28, %s4647_s16  ;;  %p4655_p7 = scmp.lt.s32.totalorder %s477_s28, %s477_s28 }
  0x88   : > { %p4656_p9 = scmp.lt.s32.totalorder %s4654_s2, %s4647_s16 }
  0x89   : > { %p4650_p2 = pnand %p4648_p0, %p5222_p8 }
  0x8a   : > { %p4657_p5 = por %p4656_p9, %p4655_p7 }
  0x8b   : > { %p4651_p4 = pneg %p4650_p2 }
  0x8d   : > { %p4658_p10 = pnand %p4657_p5, %p4651_p4 }
  0x8f   : > { %4661 = shalt.err (!%p4658_p10)
}
  0x90   : > { %4042 = dma.hbm_to_vmem [thread:$0]  (!%p5208_p6), %s5881_s7, 16, %s477_s28, [#allocation15]  }
  0x91   : > { %s4662_s26 = scalar_lea.hbm %s5839_s9, 80 }
  0x92   : > { %p4663_p1 = scmp.ne.s32.totalorder %s5839_s9, %s4662_s26  ;;  %p4669_p12 = scmp.lt.u32.totalorder %s4662_s26, %s5839_s9 }
  0x94   : > { %p4665_p3 = pnand %p4663_p1, %p5222_p8 }
  0x96   : > { %p4666_p11 = pneg %p4665_p3 }
  0x98   : > { %p4671_p13 = pnand %p4669_p12, %p4666_p11 }
  0x9a   : > { %4674 = shalt.err (!%p4671_p13)
}
  0x9b   : > { %s4675_s25 = scalar_lea.vmem %s501_s24, 80  ;;  %s4682_s28 = scalar_lea.vmem %s501_s24, 96 }
  0x9c   : > { %p4676_p0 = scmp.ne.s32.totalorder %s501_s24, %s4675_s25  ;;  %p4683_p7 = scmp.lt.s32.totalorder %s501_s24, %s501_s24 }
  0x9d   : > { %p4684_p9 = scmp.lt.s32.totalorder %s4682_s28, %s4675_s25 }
  0x9e   : > { %p4678_p2 = pnand %p4676_p0, %p5222_p8 }
  0x9f   : > { %p4685_p5 = por %p4684_p9, %p4683_p7 }
  0xa0   : > { %p4679_p4 = pneg %p4678_p2 }
  0xa2   : > { %p4686_p10 = pnand %p4685_p5, %p4679_p4 }
  0xa4   : > { %4689 = shalt.err (!%p4686_p10)
}
  0xa5   : > { %4048 = dma.hbm_to_vmem [thread:$0]  (!%p5208_p6), %s5839_s9, 80, %s501_s24, [#allocation18]  }
  0xa6   : > { %s5073_s0 = smov [#allocation20]   ;;  %s5074_s3 = smov [#allocation10]  }
  0xa7   : > { %s523_s1 = sshll.u32 %s5073_s0, 4  ;;  %s439_s29 = sshll.u32 %s5074_s3, 4  ;;  %s524_s1 = int_to_ptr.vmem [resolvable:$true] %s523_s1  ;;  %s440_s29 = int_to_ptr.vmem [resolvable:$true] %s439_s29 }
  0xa8   : > { %s4690_s21 = scalar_lea.hbm %s5841_s11, 1024 }
  0xa9   : > { %p4691_p1 = scmp.ne.s32.totalorder %s5841_s11, %s4690_s21  ;;  %p4697_p12 = scmp.lt.u32.totalorder %s4690_s21, %s5841_s11 }
  0xab   : > { %p4693_p3 = pnand %p4691_p1, %p5222_p8 }
  0xad   : > { %p4694_p11 = pneg %p4693_p3 }
  0xaf   : > { %p4699_p13 = pnand %p4697_p12, %p4694_p11 }
  0xb1   : > { %4702 = shalt.err (!%p4699_p13)
}
  0xb2   : > { %s4703_s24 = scalar_lea.vmem %s524_s1, 1024  ;;  %p4711_p7 = scmp.lt.s32.totalorder %s524_s1, %s524_s1 }
  0xb3   : > { %p4704_p0 = scmp.ne.s32.totalorder %s524_s1, %s4703_s24  ;;  %p4712_p9 = scmp.lt.s32.totalorder %s4703_s24, %s4703_s24 }
  0xb5   : > { %p4706_p2 = pnand %p4704_p0, %p5222_p8  ;;  %p4713_p5 = por %p4712_p9, %p4711_p7 }
  0xb7   : > { %p4707_p4 = pneg %p4706_p2 }
  0xb9   : > { %p4714_p10 = pnand %p4713_p5, %p4707_p4 }
  0xbb   : > { %4717 = shalt.err (!%p4714_p10)
}
  0xbc   : > { %4054 = dma.hbm_to_vmem [thread:$0]  (!%p5208_p6), %s5841_s11, 1024, %s524_s1, [#allocation21], %s5858_s19, %s5858_s19, %s5070_s20  }
  0xbd   : > { %s5882_s4 = sld [smem:[#allocation44_spill]] }
  0xc3   : > { %s4718_s26 = scalar_lea.hbm %s5882_s4, 80 }
  0xc4   : > { %p4719_p1 = scmp.ne.s32.totalorder %s5882_s4, %s4718_s26  ;;  %p4725_p12 = scmp.lt.u32.totalorder %s4718_s26, %s5882_s4 }
  0xc6   : > { %p4721_p3 = pnand %p4719_p1, %p5222_p8 }
  0xc8   : > { %p4722_p11 = pneg %p4721_p3 }
  0xca   : > { %p4727_p13 = pnand %p4725_p12, %p4722_p11 }
  0xcc   : > { %4730 = shalt.err (!%p4727_p13)
}
  0xcd   : > { %s4731_s25 = scalar_lea.vmem %s440_s29, 80  ;;  %s4738_s1 = scalar_lea.vmem %s440_s29, 96 }
  0xce   : > { %p4732_p0 = scmp.ne.s32.totalorder %s440_s29, %s4731_s25  ;;  %p4739_p7 = scmp.lt.s32.totalorder %s440_s29, %s440_s29 }
  0xcf   : > { %p4740_p9 = scmp.lt.s32.totalorder %s4738_s1, %s4731_s25 }
  0xd0   : > { %p4734_p2 = pnand %p4732_p0, %p5222_p8 }
  0xd1   : > { %p4741_p5 = por %p4740_p9, %p4739_p7 }
  0xd2   : > { %p4735_p4 = pneg %p4734_p2 }
  0xd4   : > { %p4742_p10 = pnand %p4741_p5, %p4735_p4 }
  0xd6   : > { %4745 = shalt.err (!%p4742_p10)
}
  0xd7   : > { %4033 = dma.hbm_to_vmem [thread:$0]  (!%p5208_p6), %s5882_s4, 80, %s440_s29, [#allocation9]  }
  0xd8   : > { %s5075_s16 = smov [#allocation13]   ;;  %s5076_s0 = smov [#allocation16]  }
  0xd9   : > { %s462_s2 = sshll.u32 %s5075_s16, 4  ;;  %s486_s3 = sshll.u32 %s5076_s0, 4  ;;  %s463_s2 = int_to_ptr.vmem [resolvable:$true] %s462_s2  ;;  %s487_s3 = int_to_ptr.vmem [resolvable:$true] %s486_s3 }
  0xda   : > { %s5883_s6 = sld [smem:[#allocation46_spill]] }
  0xe0   : > { %s4746_s21 = scalar_lea.hbm %s5883_s6, 1024 }
  0xe1   : > { %p4747_p1 = scmp.ne.s32.totalorder %s5883_s6, %s4746_s21  ;;  %p4753_p12 = scmp.lt.u32.totalorder %s4746_s21, %s5883_s6 }
  0xe3   : > { %p4749_p3 = pnand %p4747_p1, %p5222_p8 }
  0xe5   : > { %p4750_p11 = pneg %p4749_p3 }
  0xe7   : > { %p4755_p13 = pnand %p4753_p12, %p4750_p11 }
  0xe9   : > { %4758 = shalt.err (!%p4755_p13)
}
  0xea   : > { %s4759_s29 = scalar_lea.vmem %s463_s2, 1024  ;;  %p4767_p7 = scmp.lt.s32.totalorder %s463_s2, %s463_s2 }
  0xeb   : > { %p4760_p0 = scmp.ne.s32.totalorder %s463_s2, %s4759_s29  ;;  %p4768_p9 = scmp.lt.s32.totalorder %s4759_s29, %s4759_s29 }
  0xed   : > { %p4762_p2 = pnand %p4760_p0, %p5222_p8  ;;  %p4769_p5 = por %p4768_p9, %p4767_p7 }
  0xef   : > { %p4763_p4 = pneg %p4762_p2 }
  0xf1   : > { %p4770_p10 = pnand %p4769_p5, %p4763_p4 }
  0xf3   : > { %4773 = shalt.err (!%p4770_p10)
}
  0xf4   : > { %4039 = dma.hbm_to_vmem [thread:$0]  (!%p5208_p6), %s5883_s6, 1024, %s463_s2, [#allocation12], %s5858_s19, %s5858_s19, %s5070_s20  }
  0xf5   : > { %s4774_s26 = scalar_lea.hbm %s5838_s8, 5120 }
  0xf6   : > { %p4775_p1 = scmp.ne.s32.totalorder %s5838_s8, %s4774_s26  ;;  %p4781_p12 = scmp.lt.u32.totalorder %s4774_s26, %s5838_s8 }
  0xf8   : > { %p4777_p3 = pnand %p4775_p1, %p5222_p8 }
  0xfa   : > { %p4778_p11 = pneg %p4777_p3 }
  0xfc   : > { %p4783_p13 = pnand %p4781_p12, %p4778_p11 }
  0xfe   : > { %4786 = shalt.err (!%p4783_p13)
}
  0xff   : > { %s4787_s25 = scalar_lea.vmem %s487_s3, 5120  ;;  %p4795_p7 = scmp.lt.s32.totalorder %s487_s3, %s487_s3 }
 0x100   : > { %p4788_p0 = scmp.ne.s32.totalorder %s487_s3, %s4787_s25  ;;  %p4796_p9 = scmp.lt.s32.totalorder %s4787_s25, %s4787_s25 }
 0x102   : > { %p4790_p2 = pnand %p4788_p0, %p5222_p8  ;;  %p4797_p5 = por %p4796_p9, %p4795_p7 }
 0x104   : > { %p4791_p4 = pneg %p4790_p2 }
 0x106   : > { %p4798_p10 = pnand %p4797_p5, %p4791_p4 }
 0x108   : > { %4801 = shalt.err (!%p4798_p10)
}
 0x109   : > { %s5884_s2 = smov 20   ;;  %s5885_s1 = smov 320  }
 0x10a   : > { %4045 = dma.hbm_to_vmem [thread:$0]  (!%p5208_p6), %s5838_s8, 5120, %s487_s3, [#allocation15], %s5885_s1, %s5885_s1, %s5884_s2  }
 0x10b   : > { %s5077_s24 = smov [#allocation19]   ;;  %s5078_s0 = smov [#allocation22]  }
 0x10c   : > { %s510_s16 = sshll.u32 %s5077_s24, 4  ;;  %s537_s26 = sshll.u32 %s5078_s0, 4  ;;  %s511_s16 = int_to_ptr.vmem [resolvable:$true] %s510_s16  ;;  %s538_s26 = int_to_ptr.vmem [resolvable:$true] %s537_s26 }
 0x10d   : > { %s4802_s14 = scalar_lea.hbm %s5840_s10, 1024 }
 0x10e   : > { %p4803_p1 = scmp.ne.s32.totalorder %s5840_s10, %s4802_s14  ;;  %p4809_p12 = scmp.lt.u32.totalorder %s4802_s14, %s5840_s10 }
 0x110   : > { %p4805_p3 = pnand %p4803_p1, %p5222_p8 }
 0x112   : > { %p4806_p11 = pneg %p4805_p3 }
 0x114   : > { %p4811_p13 = pnand %p4809_p12, %p4806_p11 }
 0x116   : > { %4814 = shalt.err (!%p4811_p13)
}
 0x117   : > { %s4815_s3 = scalar_lea.vmem %s511_s16, 1024  ;;  %p4823_p7 = scmp.lt.s32.totalorder %s511_s16, %s511_s16 }
 0x118   : > { %p4816_p0 = scmp.ne.s32.totalorder %s511_s16, %s4815_s3  ;;  %p4824_p9 = scmp.lt.s32.totalorder %s4815_s3, %s4815_s3 }
 0x11a   : > { %p4818_p2 = pnand %p4816_p0, %p5222_p8  ;;  %p4825_p5 = por %p4824_p9, %p4823_p7 }
 0x11c   : > { %p4819_p4 = pneg %p4818_p2 }
 0x11e   : > { %p4826_p10 = pnand %p4825_p5, %p4819_p4 }
 0x120   : > { %4829 = shalt.err (!%p4826_p10)
}
 0x121   : > { %s5886_s2 = smov 64   ;;  %s4830_s0 = scalar_lea.hbm %s5842_s12, 16 }
 0x122   : > { %4051 = dma.hbm_to_vmem [thread:$0]  (!%p5208_p6), %s5840_s10, 1024, %s511_s16, [#allocation18], %s5886_s2, %s5886_s2, %s5070_s20  }
 0x123   : > { %p4831_p1 = scmp.ne.s32.totalorder %s5842_s12, %s4830_s0  ;;  %p4837_p12 = scmp.lt.u32.totalorder %s4830_s0, %s5842_s12 }
 0x125   : > { %p4833_p3 = pnand %p4831_p1, %p5222_p8 }
 0x127   : > { %p4834_p11 = pneg %p4833_p3 }
 0x129   : > { %p4839_p13 = pnand %p4837_p12, %p4834_p11 }
 0x12b   : > { %4842 = shalt.err (!%p4839_p13)
}
 0x12c   : > { %s4843_s25 = scalar_lea.vmem %s538_s26, 16  ;;  %s4850_s20 = scalar_lea.vmem %s538_s26, 32 }
 0x12d   : > { %p4844_p0 = scmp.ne.s32.totalorder %s538_s26, %s4843_s25  ;;  %p4851_p7 = scmp.lt.s32.totalorder %s538_s26, %s538_s26 }
 0x12e   : > { %p4852_p9 = scmp.lt.s32.totalorder %s4850_s20, %s4843_s25 }
 0x12f   : > { %p4846_p2 = pnand %p4844_p0, %p5222_p8 }
 0x130   : > { %p4853_p5 = por %p4852_p9, %p4851_p7 }
 0x131   : > { %p4847_p4 = pneg %p4846_p2 }
 0x133   : > { %p4854_p10 = pnand %p4853_p5, %p4847_p4 }
 0x135   : > { %4857 = shalt.err (!%p4854_p10)
}
 0x136   : > { %s5887_s13 = sld [smem:[#allocation36_spill]]  ;;  %s5888_s3 = sld [smem:[#allocation38_spill]] }
 0x137   : > { %4057 = dma.hbm_to_vmem [thread:$0]  (!%p5208_p6), %s5842_s12, 16, %s538_s26, [#allocation21]  }
 0x138   : > { %s3483_s2 = sadd.s32 4294967294, %s5060_s18   ;;  %s54_s19 = sadd.s32 1, %s5056_s17 }
 0x139   : > { %s61_s23 = sadd.s32 1, %s5048_s15  ;;  %p56_p8 = scmp.ge.s32.totalorder %s54_s19, 2 }
 0x13a   : > { %p68_p1 = scmp.ne.s32.totalorder %s5048_s15, %s5044_s30  ;;  %p69_p3 = scmp.eq.s32.totalorder %s5060_s18, 0 }
 0x13b   : > { %s5927_s19 = smov (%p56_p8, %s54_s19), 0  ;;  %p365_p4 = scmp.eq.s32.totalorder %s3483_s2, 1 }
 0x13c   : > { %p74_p11 = scmp.ne.s32.totalorder %s5044_s30, %s5887_s13  ;;  %p5456_p12 = por %p69_p3, %p68_p1 }
 0x13d   : > { %p5890_p6 = scmp.eq.s32.totalorder %s5888_s3, 0  ;;  %s58_s28 = ssub.s32 %s5056_s17, %s5927_s19 }
 0x13e   : > { %p359_p0 = scmp.eq.s32.totalorder %s5888_s3, 1  ;;  %p59_p2 = scmp.eq.s32.totalorder %s58_s28, 0 }
 0x13f   : > { %p5462_p13 = por %p5890_p6, %p74_p11  ;;  %p4083_p9 = scmp.lt.s32.totalorder %s5060_s18, 2 }
 0x140   : > { %p5469_p7 = por %p359_p0, %p68_p1  ;;  %p5477_p5 = por %p365_p4, %p74_p11 }
 0x141   : > { %s5891_s26 = scalar_select %p5462_p13, 1, 0 }
 0x142   : > { %s5892_s24 = scalar_select %p5469_p7, 1, 0 }
 0x143   : > { %s5475_s0 = scalar_select %p59_p2, %s5048_s15, %s61_s23  }
 0x144   : > { %s5893_s27 = scalar_select %p5477_p5, 1, 0 }
 0x145   : > { %s5482_s21 = sand.u32 1, %s5048_s15   ;;  %s3970_s22 = smul.u32 160, %s5056_s17 }
 0x146   : > { %s3969_s14 = smul.u32 10, %s5482_s21  ;;  %p5488_p10 = pnand %p4083_p9, %p5456_p12 }
 0x147   : > { %s5895_s13 = sld [smem:[#allocation40_spill]]  ;;  %s549_s1 = scalar_lea.sflag [#allocation3], %s5482_s21 }
 0x148   : > { %s552_s2 = scalar_lea.vmem [#allocation2], %s3969_s14  ;;  %p4860_p1 = pneg %p5488_p10 }
 0x149   : > { %s560_s23 = sshll.u32 %s552_s2, 4  ;;  %s5498_s23 = int_to_ptr.vmem [resolvable:$true] %s560_s23 }
 0x14d   : > { %s5496_s3 = scalar_lea.hbm %s5895_s13, %s3970_s22  ;;  %s4863_s29 = scalar_lea.hbm %s5895_s13, 320 }
 0x14e   : > { %s4858_s28 = scalar_lea.hbm %s5496_s3, 160  ;;  %p4864_p12 = scmp.lt.u32.totalorder %s5496_s3, %s5895_s13 }
 0x14f   : > { %p4859_p8 = scmp.ne.s32.totalorder %s5496_s3, %s4858_s28  ;;  %p4865_p6 = scmp.lt.u32.totalorder %s4863_s29, %s4858_s28 }
 0x150   : > { %p4867_p2 = scmp.lt.u32.totalorder %s4858_s28, %s5496_s3 }
 0x151   : > { %p4861_p3 = pnand %p4860_p1, %p4859_p8  ;;  %p4866_p0 = por %p4865_p6, %p4864_p12 }
 0x153   : > { %p4862_p11 = pneg %p4861_p3  ;;  %p4868_p4 = por %p4867_p2, %p4866_p0 }
 0x155   : > { %p4869_p9 = pnand %p4868_p4, %p4862_p11 }
 0x157   : > { %4872 = shalt.err (!%p4869_p9)
}
 0x158   : > { %s4873_s14 = scalar_lea.vmem %s5498_s23, 160  ;;  %s5079_s2 = smov [#allocation2]  }
 0x159   : > { %p4874_p8 = scmp.ne.s32.totalorder %s5498_s23, %s4873_s14  ;;  %s4878_s16 = sshll.u32 %s5079_s2, 4  ;;  %s4879_s16 = int_to_ptr.vmem [resolvable:$false] %s4878_s16 }
 0x15a   : > { %s4880_s4 = scalar_lea.vmem %s4879_s16, 320  ;;  %p4881_p7 = scmp.lt.s32.totalorder %s5498_s23, %s4879_s16 }
 0x15b   : > { %p4876_p3 = pnand %p4874_p8, %p4860_p1  ;;  %p4882_p12 = scmp.lt.s32.totalorder %s4880_s4, %s4873_s14 }
 0x15d   : > { %p4877_p5 = pneg %p4876_p3  ;;  %p4883_p6 = por %p4882_p12, %p4881_p7 }
 0x15f   : > { %p4884_p0 = pnand %p4883_p6, %p4877_p5 }
 0x161   : > { %4887 = shalt.err (!%p4884_p0)
}
 0x162   : > { %4061 = dma.hbm_to_vmem [thread:$0]  (!%p5488_p10), %s5496_s3, 160, %s5498_s23, %s549_s1  }
 0x163   : > { %s3498_s20 = sshll.u32 %s5482_s21, 3  ;;  %s3794_s28 = sshll.u32 %s5056_s17, 7 }
 0x164   : > { %s5896_s2 = sld [smem:[#allocation41_spill]]  ;;  %s571_s14 = scalar_lea.vmem [#allocation5], %s3498_s20 }
 0x165   : > { %s581_s16 = sshll.u32 %s571_s14, 4  ;;  %s5897_s4 = sand.u32 1, %s5060_s18   ;;  %s582_s16 = int_to_ptr.vmem [resolvable:$true] %s581_s16 }
 0x166   : > { %s568_s6 = scalar_lea.sflag [#allocation6], %s5897_s4 }
 0x16a   : > { %s5531_s5 = scalar_lea.hbm %s5896_s2, %s3794_s28  ;;  %s4893_s23 = scalar_lea.hbm %s5896_s2, 256 }
 0x16b   : > { %s4888_s7 = scalar_lea.hbm %s5531_s5, 128  ;;  %p4894_p2 = scmp.lt.u32.totalorder %s5531_s5, %s5896_s2 }
 0x16c   : > { %p4889_p7 = scmp.ne.s32.totalorder %s5531_s5, %s4888_s7  ;;  %p4895_p4 = scmp.lt.u32.totalorder %s4893_s23, %s4888_s7 }
 0x16d   : > { %p4897_p8 = scmp.lt.u32.totalorder %s4888_s7, %s5531_s5 }
 0x16e   : > { %p4891_p5 = pnand %p4889_p7, %p4860_p1  ;;  %p4896_p9 = por %p4895_p4, %p4894_p2 }
 0x170   : > { %p4892_p11 = pneg %p4891_p5  ;;  %p4898_p3 = por %p4897_p8, %p4896_p9 }
 0x172   : > { %p4899_p12 = pnand %p4898_p3, %p4892_p11 }
 0x174   : > { %4902 = shalt.err (!%p4899_p12)
}
 0x175   : > { %s4903_s20 = scalar_lea.vmem %s582_s16, 128  ;;  %s5080_s22 = smov [#allocation5]  }
 0x176   : > { %p4904_p6 = scmp.ne.s32.totalorder %s582_s16, %s4903_s20  ;;  %s4908_s29 = sshll.u32 %s5080_s22, 4  ;;  %s4909_s29 = int_to_ptr.vmem [resolvable:$false] %s4908_s29 }
 0x177   : > { %s4910_s14 = scalar_lea.vmem %s4909_s29, 256  ;;  %p4911_p5 = scmp.lt.s32.totalorder %s582_s16, %s4909_s29 }
 0x178   : > { %p4906_p0 = pnand %p4904_p6, %p4860_p1  ;;  %p4912_p13 = scmp.lt.s32.totalorder %s4910_s14, %s4903_s20 }
 0x17a   : > { %p4907_p7 = pneg %p4906_p0  ;;  %p4913_p2 = por %p4912_p13, %p4911_p5 }
 0x17c   : > { %p4914_p4 = pnand %p4913_p2, %p4907_p7 }
 0x17e   : > { %4917 = shalt.err (!%p4914_p4)
}
 0x17f   : > { %4064 = dma.hbm_to_vmem [thread:$0]  (!%p5488_p10), %s5531_s5, 128, %s582_s16, %s568_s6  }
 0x180   : > { %s5898_s7 = sld [smem:[#allocation39_spill]] }
 0x186   : > { %p5899_p11 = scmp.ne.s32.totalorder %s5898_s7, 0 }
 0x187   : > { %s5557_s4 = sand.u32 (!%p5899_p11), 1, %s5044_s30   ;;  %p5900_p13 = scmp.ne.s32.totalorder (!%p5899_p11), %s5891_s26, 0 }
 0x188   : > { %590 = sbr.rel (%p5899_p11) target bundleno = 1686 (0x696), region = 72  ;;  %s593_s3 = scalar_lea.sflag (!%p5899_p11), [#allocation3], %s5557_s4 }
 0x189   : > { %s3971_s21 = smul.u32 (!%p5899_p11), 10, %s5557_s4 }
 0x18b   : > { %s5561_s23 = scalar_lea.vmem (!%p5899_p11), [#allocation2], %s3971_s21 }
 0x18f   : > { %4999 = dma.done.wait (%p5900_p13), %s593_s3, 160  }
 0x190   : > { %5001 = vsyncadd (%p5900_p13), %s593_s3, 4294967136  ;;  %s5901_s25 = sld [smem:[#allocation38_spill]]  ;;  %s3502_s6 = sshll.u32 %s5557_s4, 3 }
 0x191   : > { %s5569_s1 = scalar_lea.vmem [#allocation5], %s3502_s6 }
 0x196   : > { %s601_s5 = sand.u32 1, %s5901_s25  }
 0x197   : > { %s602_s16 = scalar_lea.sflag [#allocation6], %s601_s5 }
 0x198   : > { %5003 = dma.done.wait (%p5900_p13), %s602_s16, 128  }
 0x199   : > { %5005 = vsyncadd (%p5900_p13), %s602_s16, 4294967168  ;;  %p5902_p10 = scmp.eq.s32.totalorder %s5901_s25, 0 }
 0x19b   : > { %5007 = dma.done.wait (%p5902_p10), [#allocation6], 20480   ;;  %p5903_p1 = pmov %p5902_p10 }
 0x19d   : > { %5009 = vsyncadd (%p5903_p1), [#allocation6], 4294946816  ;;  %p5904_p9 = pmov %p5903_p1 }
 0x19e   : > { %p5905_p8 = pmov %p5903_p1 }
 0x19f   : > { %5011 = dma.done.wait (%p5904_p9), [#allocation9], 5200  }
 0x1a0   : > { %5013 = vsyncadd (%p5905_p8), [#allocation9], 4294962096  ;;  %p5906_p3 = pmov %p5903_p1 }
 0x1a1   : > { %p5907_p12 = pmov %p5903_p1 }
 0x1a2   : > { %5015 = dma.done.wait (%p5906_p3), [#allocation12], 2048  }
 0x1a3   : > { %5017 = vsyncadd (%p5907_p12), [#allocation12], 4294965248  ;;  %p5908_p6 = pmov %p5903_p1 }
 0x1a4   : > { %p5909_p0 = pmov %p5903_p1 }
 0x1a5   : > { %5019 = dma.done.wait (%p5908_p6), [#allocation15], 5136  }
 0x1a6   : > { %5021 = vsyncadd (%p5909_p0), [#allocation15], 4294962160  ;;  %p5910_p7 = pmov %p5909_p0 }
 0x1a7   : > { %p5911_p5 = pmov %p5909_p0 }
 0x1a8   : > { %5023 = dma.done.wait (%p5910_p7), [#allocation18], 1104  }
 0x1a9   : > { %5025 = vsyncadd (%p5911_p5), [#allocation18], 4294966192  ;;  %p5912_p2 = pmov %p5909_p0 }
 0x1aa   : > { %p5913_p4 = pmov %p5909_p0 }
 0x1ab   : > { %5027 = dma.done.wait (%p5912_p2), [#allocation21], 1040  }
 0x1ac   : > { %5029 = vsyncadd (%p5913_p4), [#allocation21], 4294966256  ;;  %v4164_v0 = vld [vmem:[#allocation7 + $0x4] ss:$40 sps:$4 sm:$0xff]   ;;  %v4166_v1 = vld [vmem:[#allocation7] ss:$40 sps:$4 sm:$0xff]  }
 0x1ad   : > { %1725 = vmatprep.subr.bf16.mxu0 %v4164_v0  ;;  %v4167_v2 = vld [vmem:[#allocation7 + $0xc] ss:$40 sps:$4 sm:$0xff]   ;;  %v4169_v3 = vld [vmem:[#allocation7 + $0x8] ss:$40 sps:$4 sm:$0xff]   ;;  %v4173_v6 = vld [vmem:[#allocation7 + $0x5c] ss:$40 sps:$4 sm:$0xff]  }
 0x1ae   : > { %1726 = vmatpush1.bf16.msra.mxu0 %v4166_v1  ;;  %v4170_v4 = vld [vmem:[#allocation7 + $0x54] ss:$40 sps:$4 sm:$0xff]   ;;  %v4172_v5 = vld [vmem:[#allocation7 + $0x50] ss:$40 sps:$4 sm:$0xff]   ;;  %1766 = vmatprep.subr.bf16.mxu1 %v4167_v2  ;;  %v4176_v8 = vld [vmem:[#allocation7 + $0xa4] ss:$40 sps:$4 sm:$0xff]  }
 0x1af   : > { %1767 = vmatpush1.bf16.msra.mxu1 %v4169_v3  ;;  %1727 = vmatprep.subr.bf16.mxu0 %v4170_v4  ;;  %v4175_v7 = vld [vmem:[#allocation7 + $0x58] ss:$40 sps:$4 sm:$0xff]   ;;  %v4179_v10 = vld [vmem:[#allocation7 + $0xac] ss:$40 sps:$4 sm:$0xff]   ;;  %v4181_v12 = vld [vmem:[#allocation7 + $0xa8] ss:$40 sps:$4 sm:$0xff]  }
 0x1b0   : > { %1768 = vmatprep.subr.bf16.mxu1 %v4173_v6  ;;  %v4178_v9 = vld [vmem:[#allocation7 + $0xa0] ss:$40 sps:$4 sm:$0xff]   ;;  %v4182_v11 = vld [vmem:[#allocation7 + $0xf4] ss:$40 sps:$4 sm:$0xff]   ;;  %v4184_v14 = vld [vmem:[#allocation7 + $0xf0] ss:$40 sps:$4 sm:$0xff]  }
 0x1b1   : > { %v4185_v13 = vld [vmem:[#allocation7 + $0xfc] ss:$40 sps:$4 sm:$0xff]   ;;  %v4187_v16 = vld [vmem:[#allocation7 + $0xf8] ss:$40 sps:$4 sm:$0xff]   ;;  %v4191_v17 = vld [vmem:[#allocation7 + $0x14c] ss:$40 sps:$4 sm:$0xff]  }
 0x1b2   : > { %1728 = vmatpush1.bf16.msra.mxu0 %v4172_v5  ;;  %v4188_v15 = vld [vmem:[#allocation7 + $0x144] ss:$40 sps:$4 sm:$0xff]   ;;  %v4190_v18 = vld [vmem:[#allocation7 + $0x140] ss:$40 sps:$4 sm:$0xff]   ;;  %v4194_v19 = vld [vmem:[#allocation7 + $0x194] ss:$40 sps:$4 sm:$0xff]  }
 0x1b3   : > { %1729 = vmatprep.subr.bf16.mxu0 %v4176_v8  ;;  %1769 = vmatpush1.bf16.msra.mxu1 %v4175_v7  ;;  %v4193_v20 = vld [vmem:[#allocation7 + $0x148] ss:$40 sps:$4 sm:$0xff]   ;;  %v4197_v21 = vld [vmem:[#allocation7 + $0x19c] ss:$40 sps:$4 sm:$0xff]   ;;  %v4199_v24 = vld [vmem:[#allocation7 + $0x198] ss:$40 sps:$4 sm:$0xff]  }
 0x1b4   : > { %1770 = vmatprep.subr.bf16.mxu1 %v4179_v10  ;;  %v4196_v22 = vld [vmem:[#allocation7 + $0x190] ss:$40 sps:$4 sm:$0xff]   ;;  %v4200_v23 = vld [vmem:[#allocation7 + $0x1e4] ss:$40 sps:$4 sm:$0xff]   ;;  %v4202_v26 = vld [vmem:[#allocation7 + $0x1e0] ss:$40 sps:$4 sm:$0xff]  }
 0x1b5   : > { %v4203_v25 = vld [vmem:[#allocation7 + $0x1ec] ss:$40 sps:$4 sm:$0xff]   ;;  %v4205_v28 = vld [vmem:[#allocation7 + $0x1e8] ss:$40 sps:$4 sm:$0xff]   ;;  %v4209_v29 = vld [vmem:[#allocation7 + $0x23c] ss:$40 sps:$4 sm:$0xff]  }
 0x1b6   : > { %1730 = vmatpush1.bf16.msra.mxu0 %v4178_v9  ;;  %v4206_v27 = vld [vmem:[#allocation7 + $0x234] ss:$40 sps:$4 sm:$0xff]   ;;  %v4208_v30 = vld [vmem:[#allocation7 + $0x230] ss:$40 sps:$4 sm:$0xff]   ;;  %v4212_v31 = vld [vmem:[#allocation7 + $0x284] ss:$40 sps:$4 sm:$0xff]  }
 0x1b7   : > { %1731 = vmatprep.subr.bf16.mxu0 %v4182_v11  ;;  %1771 = vmatpush1.bf16.msra.mxu1 %v4181_v12  ;;  %v4211_v32 = vld [vmem:[#allocation7 + $0x238] ss:$40 sps:$4 sm:$0xff]   ;;  %v4215_v33 = vld [vmem:[#allocation7 + $0x28c] ss:$40 sps:$4 sm:$0xff]   ;;  %v4217_v36 = vld [vmem:[#allocation7 + $0x288] ss:$40 sps:$4 sm:$0xff]  }
 0x1b8   : > { %1772 = vmatprep.subr.bf16.mxu1 %v4185_v13  ;;  %v4214_v34 = vld [vmem:[#allocation7 + $0x280] ss:$40 sps:$4 sm:$0xff]   ;;  %v4218_v35 = vld [vmem:[#allocation7 + $0x2d4] ss:$40 sps:$4 sm:$0xff]   ;;  %v4220_v38 = vld [vmem:[#allocation7 + $0x2d0] ss:$40 sps:$4 sm:$0xff]  }
 0x1b9   : > { %v4221_v37 = vld [vmem:[#allocation7 + $0x2dc] ss:$40 sps:$4 sm:$0xff]   ;;  %v4223_v40 = vld [vmem:[#allocation7 + $0x2d8] ss:$40 sps:$4 sm:$0xff]   ;;  %v4227_v41 = vld [vmem:[#allocation7 + $0x32c] ss:$40 sps:$4 sm:$0xff]  }
 0x1ba   : > { %1732 = vmatpush1.bf16.msra.mxu0 %v4184_v14  ;;  %v4224_v39 = vld [vmem:[#allocation7 + $0x324] ss:$40 sps:$4 sm:$0xff]   ;;  %v4226_v42 = vld [vmem:[#allocation7 + $0x320] ss:$40 sps:$4 sm:$0xff]   ;;  %v4230_v43 = vld [vmem:[#allocation7 + $0x374] ss:$40 sps:$4 sm:$0xff]  }
 0x1bb   : > { %1733 = vmatprep.subr.bf16.mxu0 %v4188_v15  ;;  %1773 = vmatpush1.bf16.msra.mxu1 %v4187_v16  ;;  %v4229_v44 = vld [vmem:[#allocation7 + $0x328] ss:$40 sps:$4 sm:$0xff]   ;;  %v4233_v45 = vld [vmem:[#allocation7 + $0x37c] ss:$40 sps:$4 sm:$0xff]   ;;  %v4235_v50 = vld [vmem:[#allocation7 + $0x378] ss:$40 sps:$4 sm:$0xff]  }
 0x1bc   : > { %1774 = vmatprep.subr.bf16.mxu1 %v4191_v17  ;;  %v703_v46 = vld [vmem:[%s5569_s1] sm:$0xff]  ;;  %v4236_v49 = vld [vmem:[#allocation7 + $0x3c4] ss:$40 sps:$4 sm:$0xff]   ;;  %v4238_v52 = vld [vmem:[#allocation7 + $0x3c0] ss:$40 sps:$4 sm:$0xff]   ;;  %vm5083_vm0 = vmmov 0  }
 0x1bd   : > { %v4232_v47 = vld [vmem:[#allocation7 + $0x370] ss:$40 sps:$4 sm:$0xff]   ;;  %v5600_v48 = vcombine.high %v703_v46, %v703_v46  ;;  %v4239_v51 = vld [vmem:[#allocation7 + $0x3cc] ss:$40 sps:$4 sm:$0xff]   ;;  %v4245_v55 = vld [vmem:[#allocation7 + $0x41c] ss:$40 sps:$4 sm:$0xff]   ;;  %v5604_v3 = vcombine.low %v703_v46, %v703_v46 }
 0x1be   : > { %1734 = vmatpush1.bf16.msra.mxu0 %v4190_v18  ;;  %v4242_v53 = vld [vmem:[#allocation7 + $0x414] ss:$40 sps:$4 sm:$0xff]   ;;  %v4241_v54 = vld [vmem:[#allocation7 + $0x3c8] ss:$40 sps:$4 sm:$0xff]   ;;  %v4248_v57 = vld [vmem:[#allocation7 + $0x464] ss:$40 sps:$4 sm:$0xff]  }
 0x1bf   : > { %1735 = vmatprep.subr.bf16.mxu0 %v4194_v19  ;;  %1775 = vmatpush1.bf16.msra.mxu1 %v4193_v20  ;;  %v4244_v56 = vld [vmem:[#allocation7 + $0x410] ss:$40 sps:$4 sm:$0xff]   ;;  %v4251_v59 = vld [vmem:[#allocation7 + $0x46c] ss:$40 sps:$4 sm:$0xff]   ;;  %v4250_v60 = vld [vmem:[#allocation7 + $0x460] ss:$40 sps:$4 sm:$0xff]  }
 0x1c0   : > { %1776 = vmatprep.subr.bf16.mxu1 %v4197_v21  ;;  %1757 = vmatprep.mubr.bf16.mxu0 %v5600_v48  ;;  %v4247_v58 = vld [vmem:[#allocation7 + $0x418] ss:$40 sps:$4 sm:$0xff]   ;;  %v4254_v61 = vld [vmem:[#allocation7 + $0x4b4] ss:$40 sps:$4 sm:$0xff]   ;;  %v4253_v62 = vld [vmem:[#allocation7 + $0x468] ss:$40 sps:$4 sm:$0xff]  }
 0x1c1   : > { %1798 = vmatprep.mubr.bf16.mxu1 %v5600_v48  ;;  %v4257_v63 = vld [vmem:[#allocation7 + $0x4bc] ss:$40 sps:$4 sm:$0xff]   ;;  %v4256_v0 = vld [vmem:[#allocation7 + $0x4b0] ss:$40 sps:$4 sm:$0xff]   ;;  %v4273_v8 = vld [vmem:[#allocation7 + $0x6c] ss:$40 sps:$4 sm:$0xff]  }
 0x1c2   : > { %1736 = vmatpush1.bf16.msra.mxu0 %v4196_v22  ;;  %v4264_v1 = vld [vmem:[#allocation7 + $0x14] ss:$40 sps:$4 sm:$0xff]   ;;  %v4259_v2 = vld [vmem:[#allocation7 + $0x4b8] ss:$40 sps:$4 sm:$0xff]   ;;  %v4270_v6 = vld [vmem:[#allocation7 + $0x64] ss:$40 sps:$4 sm:$0xff]  }
 0x1c3   : > { %1737 = vmatprep.subr.bf16.mxu0 %v4200_v23  ;;  %1777 = vmatpush1.bf16.msra.mxu1 %v4199_v24  ;;  %v4267_v4 = vld [vmem:[#allocation7 + $0x1c] ss:$40 sps:$4 sm:$0xff]   ;;  %v4262_v5 = vld [vmem:[#allocation7 + $0x10] ss:$40 sps:$4 sm:$0xff]   ;;  %v4268_v9 = vld [vmem:[#allocation7 + $0x60] ss:$40 sps:$4 sm:$0xff]  }
 0x1c4   : > { %1778 = vmatprep.subr.bf16.mxu1 %v4203_v25  ;;  %v4265_v7 = vld [vmem:[#allocation7 + $0x18] ss:$40 sps:$4 sm:$0xff]   ;;  %v4276_v10 = vld [vmem:[#allocation7 + $0xb4] ss:$40 sps:$4 sm:$0xff]   ;;  %v4271_v11 = vld [vmem:[#allocation7 + $0x68] ss:$40 sps:$4 sm:$0xff]  }
 0x1c5   : > { %v4279_v12 = vld [vmem:[#allocation7 + $0xbc] ss:$40 sps:$4 sm:$0xff]   ;;  %v4274_v13 = vld [vmem:[#allocation7 + $0xb0] ss:$40 sps:$4 sm:$0xff]   ;;  %v4285_v16 = vld [vmem:[#allocation7 + $0x10c] ss:$40 sps:$4 sm:$0xff]  }
 0x1c6   : > { %1738 = vmatpush1.bf16.msra.mxu0 %v4202_v26  ;;  %v4282_v14 = vld [vmem:[#allocation7 + $0x104] ss:$40 sps:$4 sm:$0xff]   ;;  %v4277_v15 = vld [vmem:[#allocation7 + $0xb8] ss:$40 sps:$4 sm:$0xff]   ;;  %v4288_v18 = vld [vmem:[#allocation7 + $0x154] ss:$40 sps:$4 sm:$0xff]  }
 0x1c7   : > { %1739 = vmatprep.subr.bf16.mxu0 %v4206_v27  ;;  %1779 = vmatpush1.bf16.msra.mxu1 %v4205_v28  ;;  %v4280_v17 = vld [vmem:[#allocation7 + $0x100] ss:$40 sps:$4 sm:$0xff]   ;;  %v4291_v20 = vld [vmem:[#allocation7 + $0x15c] ss:$40 sps:$4 sm:$0xff]   ;;  %v4286_v21 = vld [vmem:[#allocation7 + $0x150] ss:$40 sps:$4 sm:$0xff]  }
 0x1c8   : > { %1780 = vmatprep.subr.bf16.mxu1 %v4209_v29  ;;  %v4283_v19 = vld [vmem:[#allocation7 + $0x108] ss:$40 sps:$4 sm:$0xff]   ;;  %v4294_v22 = vld [vmem:[#allocation7 + $0x1a4] ss:$40 sps:$4 sm:$0xff]   ;;  %v4289_v23 = vld [vmem:[#allocation7 + $0x158] ss:$40 sps:$4 sm:$0xff]  }
 0x1c9   : > { %v4297_v24 = vld [vmem:[#allocation7 + $0x1ac] ss:$40 sps:$4 sm:$0xff]   ;;  %v4292_v25 = vld [vmem:[#allocation7 + $0x1a0] ss:$40 sps:$4 sm:$0xff]   ;;  %v4303_v28 = vld [vmem:[#allocation7 + $0x1fc] ss:$40 sps:$4 sm:$0xff]  }
 0x1ca   : > { %1740 = vmatpush1.bf16.msra.mxu0 %v4208_v30  ;;  %v4300_v26 = vld [vmem:[#allocation7 + $0x1f4] ss:$40 sps:$4 sm:$0xff]   ;;  %v4295_v27 = vld [vmem:[#allocation7 + $0x1a8] ss:$40 sps:$4 sm:$0xff]   ;;  %v4306_v30 = vld [vmem:[#allocation7 + $0x244] ss:$40 sps:$4 sm:$0xff]  }
 0x1cb   : > { %1741 = vmatprep.subr.bf16.mxu0 %v4212_v31  ;;  %1781 = vmatpush1.bf16.msra.mxu1 %v4211_v32  ;;  %v4298_v29 = vld [vmem:[#allocation7 + $0x1f0] ss:$40 sps:$4 sm:$0xff]   ;;  %v4309_v32 = vld [vmem:[#allocation7 + $0x24c] ss:$40 sps:$4 sm:$0xff]   ;;  %vm2561_vm1 = vcmask 39936   ;;  %s5914_s26 = sld [smem:[#allocation37_spill]] }
 0x1cc   : > { %1782 = vmatprep.subr.bf16.mxu1 %v4215_v33  ;;  %v4301_v31 = vld [vmem:[#allocation7 + $0x1f8] ss:$40 sps:$4 sm:$0xff]   ;;  %v4330_v46 = vld [vmem:[#allocation7 + $0x384] ss:$40 sps:$4 sm:$0xff]   ;;  %vm2573_vm2 = vcmask 57344   ;;  %s695_s28 = scalar_lea.vmem [#allocation23], %s5557_s4 }
 0x1cd   : > { %v4304_v33 = vld [vmem:[#allocation7 + $0x240] ss:$40 sps:$4 sm:$0xff]   ;;  %s5915_s14 = sld [smem:[#allocation48_spill]]  ;;  %s3234_s21 = sshll.u32 %s695_s28, 4  ;;  %s3235_s21 = int_to_ptr.vmem [resolvable:$true] %s3234_s21 }
 0x1ce   : > { %1742 = vmatpush1.bf16.msra.mxu0 %v4214_v34  ;;  %v4312_v34 = vld [vmem:[#allocation7 + $0x294] ss:$40 sps:$4 sm:$0xff]   ;;  %s3217_s3 = scalar_lea.sflag [#allocation4], %s5557_s4  ;;  %p5916_p13 = scmp.ne.s32.totalorder %s5892_s24, 0 }
 0x1cf   : > { %1743 = vmatprep.subr.bf16.mxu0 %v4218_v35  ;;  %1783 = vmatpush1.bf16.msra.mxu1 %v4217_v36  ;;  %v4307_v35 = vld [vmem:[#allocation7 + $0x248] ss:$40 sps:$4 sm:$0xff]   ;;  %v4315_v36 = vld [vmem:[#allocation7 + $0x29c] ss:$40 sps:$4 sm:$0xff]   ;;  %s5084_s25 = smov [#allocation23]  }
 0x1d0   : > { %1784 = vmatprep.subr.bf16.mxu1 %v4221_v37  ;;  %v4310_v37 = vld [vmem:[#allocation7 + $0x290] ss:$40 sps:$4 sm:$0xff]   ;;  %s4922_s5 = sshll.u32 %s5084_s25, 4  ;;  %s4923_s5 = int_to_ptr.vmem [resolvable:$false] %s4922_s5 }
 0x1d1   : > { %s3790_s20 = sshll.u32 %s5914_s26, 4  ;;  %s4924_s6 = scalar_lea.vmem %s4923_s5, 32 }
 0x1d2   : > { %1744 = vmatpush1.bf16.msra.mxu0 %v4220_v38  ;;  %v4318_v38 = vld [vmem:[#allocation7 + $0x2e4] ss:$40 sps:$4 sm:$0xff]   ;;  %p4925_p9 = scmp.lt.s32.totalorder %s3235_s21, %s4923_s5 }
 0x1d3   : > { %1745 = vmatprep.subr.bf16.mxu0 %v4224_v39  ;;  %1785 = vmatpush1.bf16.msra.mxu1 %v4223_v40  ;;  %v4313_v39 = vld [vmem:[#allocation7 + $0x298] ss:$40 sps:$4 sm:$0xff]   ;;  %v4321_v40 = vld [vmem:[#allocation7 + $0x2ec] ss:$40 sps:$4 sm:$0xff]   ;;  %s5754_s7 = scalar_lea.hbm %s5915_s14, %s3790_s20 }
 0x1d4   : > { %1786 = vmatprep.subr.bf16.mxu1 %v4227_v41  ;;  %v4316_v41 = vld [vmem:[#allocation7 + $0x2e0] ss:$40 sps:$4 sm:$0xff]  }
 0x1d6   : > { %1746 = vmatpush1.bf16.msra.mxu0 %v4226_v42  ;;  %v4324_v42 = vld [vmem:[#allocation7 + $0x334] ss:$40 sps:$4 sm:$0xff]  }
 0x1d7   : > { %1747 = vmatprep.subr.bf16.mxu0 %v4230_v43  ;;  %1787 = vmatpush1.bf16.msra.mxu1 %v4229_v44  ;;  %v4319_v43 = vld [vmem:[#allocation7 + $0x2e8] ss:$40 sps:$4 sm:$0xff]   ;;  %v4327_v44 = vld [vmem:[#allocation7 + $0x33c] ss:$40 sps:$4 sm:$0xff]  }
 0x1d8   : > { %1788 = vmatprep.subr.bf16.mxu1 %v4233_v45  ;;  %v4322_v45 = vld [vmem:[#allocation7 + $0x330] ss:$40 sps:$4 sm:$0xff]  }
 0x1da   : > { %1748 = vmatpush1.bf16.msra.mxu0 %v4232_v47  ;;  %v4325_v47 = vld [vmem:[#allocation7 + $0x338] ss:$40 sps:$4 sm:$0xff]  }
 0x1db   : > { %1749 = vmatprep.subr.bf16.mxu0 %v4236_v49  ;;  %1789 = vmatpush1.bf16.msra.mxu1 %v4235_v50  ;;  %v4328_v49 = vld [vmem:[#allocation7 + $0x380] ss:$40 sps:$4 sm:$0xff]   ;;  %v4333_v50 = vld [vmem:[#allocation7 + $0x38c] ss:$40 sps:$4 sm:$0xff]  }
 0x1dc   : > { %1790 = vmatprep.subr.bf16.mxu1 %v4239_v51  ;;  %v4331_v51 = vld [vmem:[#allocation7 + $0x388] ss:$40 sps:$4 sm:$0xff]  }
 0x1de   : > { %1750 = vmatpush1.bf16.msra.mxu0 %v4238_v52  ;;  %v4336_v52 = vld [vmem:[#allocation7 + $0x3d4] ss:$40 sps:$4 sm:$0xff]  }
 0x1df   : > { %1751 = vmatprep.subr.bf16.mxu0 %v4242_v53  ;;  %1791 = vmatpush1.bf16.msra.mxu1 %v4241_v54  ;;  %v4339_v53 = vld [vmem:[#allocation7 + $0x3dc] ss:$40 sps:$4 sm:$0xff]   ;;  %v4334_v54 = vld [vmem:[#allocation7 + $0x3d0] ss:$40 sps:$4 sm:$0xff]  }
 0x1e0   : > { %1792 = vmatprep.subr.bf16.mxu1 %v4245_v55  ;;  %v4342_v55 = vld [vmem:[#allocation7 + $0x424] ss:$40 sps:$4 sm:$0xff]  }
 0x1e2   : > { %1752 = vmatpush1.bf16.msra.mxu0 %v4244_v56  ;;  %v4337_v56 = vld [vmem:[#allocation7 + $0x3d8] ss:$40 sps:$4 sm:$0xff]  }
 0x1e3   : > { %1753 = vmatprep.subr.bf16.mxu0 %v4248_v57  ;;  %1793 = vmatpush1.bf16.msra.mxu1 %v4247_v58  ;;  %v4345_v57 = vld [vmem:[#allocation7 + $0x42c] ss:$40 sps:$4 sm:$0xff]   ;;  %v4340_v58 = vld [vmem:[#allocation7 + $0x420] ss:$40 sps:$4 sm:$0xff]  }
 0x1e4   : > { %1794 = vmatprep.subr.bf16.mxu1 %v4251_v59  ;;  %v4348_v59 = vld [vmem:[#allocation7 + $0x474] ss:$40 sps:$4 sm:$0xff]  }
 0x1e6   : > { %1754 = vmatpush1.bf16.msra.mxu0 %v4250_v60  ;;  %v4343_v60 = vld [vmem:[#allocation7 + $0x428] ss:$40 sps:$4 sm:$0xff]  }
 0x1e7   : > { %1755 = vmatprep.subr.bf16.mxu0 %v4254_v61  ;;  %1795 = vmatpush1.bf16.msra.mxu1 %v4253_v62  ;;  %v4351_v61 = vld [vmem:[#allocation7 + $0x47c] ss:$40 sps:$4 sm:$0xff]   ;;  %v4346_v62 = vld [vmem:[#allocation7 + $0x470] ss:$40 sps:$4 sm:$0xff]  }
 0x1e8   : > { %1796 = vmatprep.subr.bf16.mxu1 %v4257_v63  ;;  %v4354_v63 = vld [vmem:[#allocation7 + $0x4c4] ss:$40 sps:$4 sm:$0xff]  }
 0x1ea   : > { %1756 = vmatpush1.bf16.msra.mxu0 %v4256_v0  ;;  %v4349_v0 = vld [vmem:[#allocation7 + $0x478] ss:$40 sps:$4 sm:$0xff]  }
 0x1eb   : > { %1807 = vmatprep.subr.bf16.mxu0 %v4264_v1  ;;  %1797 = vmatpush1.bf16.msra.mxu1 %v4259_v2  ;;  %v4357_v1 = vld [vmem:[#allocation7 + $0x4cc] ss:$40 sps:$4 sm:$0xff]   ;;  %v4352_v2 = vld [vmem:[#allocation7 + $0x4c0] ss:$40 sps:$4 sm:$0xff]  }
 0x1ec   : > { %1848 = vmatprep.subr.bf16.mxu1 %v4267_v4  ;;  %v4360_v4 = vld [vmem:[#allocation7 + $0x24] ss:$40 sps:$4 sm:$0xff]  }
 0x1ed   : > { %1758 = vmatmul.mubr.bf16.vlgmr.msra.gmra.mrb[0].mxu0 %v5604_v3 }
 0x1ee   : > { %1808 = vmatpush1.bf16.msra.mxu0 %v4262_v5  ;;  %1839 = vmatprep.mubr.bf16.mxu0 %v5600_v48  ;;  %v4355_v5 = vld [vmem:[#allocation7 + $0x4c8] ss:$40 sps:$4 sm:$0xff]  }
 0x1ef   : > { %1799 = vmatmul.mubr.bf16.vlgmr.msra.gmra.mrb[0].mxu1 %v5604_v3  ;;  %1809 = vmatprep.subr.bf16.mxu0 %v4270_v6  ;;  %v4358_v6 = vld [vmem:[#allocation7 + $0x20] ss:$40 sps:$4 sm:$0xff]  }
 0x1f0   : > { %1849 = vmatpush1.bf16.msra.mxu1 %v4265_v7  ;;  %1880 = vmatprep.mubr.bf16.mxu1 %v5600_v48  ;;  %v4363_v7 = vld [vmem:[#allocation7 + $0x74] ss:$40 sps:$4 sm:$0xff]  }
 0x1f1   : > { %1850 = vmatprep.subr.bf16.mxu1 %v4273_v8  ;;  %v4361_v8 = vld [vmem:[#allocation7 + $0x70] ss:$40 sps:$4 sm:$0xff]  }
 0x1f2   : > { %1810 = vmatpush1.bf16.msra.mxu0 %v4268_v9  ;;  %v4366_v9 = vld [vmem:[#allocation7 + $0xc4] ss:$40 sps:$4 sm:$0xff]  }
 0x1f3   : > { %1811 = vmatprep.subr.bf16.mxu0 %v4276_v10  ;;  %v4364_v10 = vld [vmem:[#allocation7 + $0xc0] ss:$40 sps:$4 sm:$0xff]  }
 0x1f4   : > { %1851 = vmatpush1.bf16.msra.mxu1 %v4271_v11  ;;  %v4369_v11 = vld [vmem:[#allocation7 + $0x114] ss:$40 sps:$4 sm:$0xff]  }
 0x1f5   : > { %1852 = vmatprep.subr.bf16.mxu1 %v4279_v12  ;;  %v4367_v12 = vld [vmem:[#allocation7 + $0x110] ss:$40 sps:$4 sm:$0xff]  }
 0x1f6   : > { %1812 = vmatpush1.bf16.msra.mxu0 %v4274_v13  ;;  %v4372_v13 = vld [vmem:[#allocation7 + $0x164] ss:$40 sps:$4 sm:$0xff]  }
 0x1f7   : > { %1813 = vmatprep.subr.bf16.mxu0 %v4282_v14  ;;  %v4370_v14 = vld [vmem:[#allocation7 + $0x160] ss:$40 sps:$4 sm:$0xff]  }
 0x1f8   : > { %1853 = vmatpush1.bf16.msra.mxu1 %v4277_v15  ;;  %v4375_v15 = vld [vmem:[#allocation7 + $0x1b4] ss:$40 sps:$4 sm:$0xff]  }
 0x1f9   : > { %1854 = vmatprep.subr.bf16.mxu1 %v4285_v16  ;;  %v4373_v16 = vld [vmem:[#allocation7 + $0x1b0] ss:$40 sps:$4 sm:$0xff]  }
 0x1fa   : > { %1814 = vmatpush1.bf16.msra.mxu0 %v4280_v17  ;;  %v4378_v17 = vld [vmem:[#allocation7 + $0x204] ss:$40 sps:$4 sm:$0xff]  }
 0x1fb   : > { %1815 = vmatprep.subr.bf16.mxu0 %v4288_v18  ;;  %v4381_v18 = vld [vmem:[#allocation7 + $0x254] ss:$40 sps:$4 sm:$0xff]  }
 0x1fc   : > { %1855 = vmatpush1.bf16.msra.mxu1 %v4283_v19  ;;  %v4379_v19 = vld [vmem:[#allocation7 + $0x250] ss:$40 sps:$4 sm:$0xff]  }
 0x1fd   : > { %1856 = vmatprep.subr.bf16.mxu1 %v4291_v20  ;;  %v4384_v20 = vld [vmem:[#allocation7 + $0x2a4] ss:$40 sps:$4 sm:$0xff]  }
 0x1fe   : > { %1816 = vmatpush1.bf16.msra.mxu0 %v4286_v21  ;;  %v4406_v21 = vld [vmem:[#allocation8] ss:$20 sps:$4 sm:$0xff]  }
 0x1ff   : > { %1817 = vmatprep.subr.bf16.mxu0 %v4294_v22  ;;  %v4408_v22 = vld [vmem:[#allocation8 + $0x4] ss:$20 sps:$4 sm:$0xff]  }
 0x200   : > { %1857 = vmatpush1.bf16.msra.mxu1 %v4289_v23  ;;  %v4412_v23 = vld [vmem:[#allocation8 + $0x2c] ss:$20 sps:$4 sm:$0xff]  }
 0x201   : > { %1858 = vmatprep.subr.bf16.mxu1 %v4297_v24  ;;  %v4382_v24 = vld [vmem:[#allocation7 + $0x2a0] ss:$40 sps:$4 sm:$0xff]  }
 0x202   : > { %1818 = vmatpush1.bf16.msra.mxu0 %v4292_v25  ;;  %v4387_v25 = vld [vmem:[#allocation7 + $0x2f4] ss:$40 sps:$4 sm:$0xff]  }
 0x203   : > { %1819 = vmatprep.subr.bf16.mxu0 %v4300_v26  ;;  %v4410_v26 = vld [vmem:[#allocation8 + $0x28] ss:$20 sps:$4 sm:$0xff]  }
 0x204   : > { %1859 = vmatpush1.bf16.msra.mxu1 %v4295_v27  ;;  %v4416_v27 = vld [vmem:[#allocation8 + $0x54] ss:$20 sps:$4 sm:$0xff]  }
 0x205   : > { %1860 = vmatprep.subr.bf16.mxu1 %v4303_v28  ;;  %v4385_v28 = vld [vmem:[#allocation7 + $0x2f0] ss:$40 sps:$4 sm:$0xff]  }
 0x206   : > { %1820 = vmatpush1.bf16.msra.mxu0 %v4298_v29  ;;  %v4390_v29 = vld [vmem:[#allocation7 + $0x344] ss:$40 sps:$4 sm:$0xff]  }
 0x207   : > { %1821 = vmatprep.subr.bf16.mxu0 %v4306_v30  ;;  %v4414_v30 = vld [vmem:[#allocation8 + $0x50] ss:$20 sps:$4 sm:$0xff]  }
 0x208   : > { %1861 = vmatpush1.bf16.msra.mxu1 %v4301_v31  ;;  %v4420_v31 = vld [vmem:[#allocation8 + $0x7c] ss:$20 sps:$4 sm:$0xff]  }
 0x209   : > { %1862 = vmatprep.subr.bf16.mxu1 %v4309_v32  ;;  %v4388_v32 = vld [vmem:[#allocation7 + $0x340] ss:$40 sps:$4 sm:$0xff]  }
 0x20a   : > { %1822 = vmatpush1.bf16.msra.mxu0 %v4304_v33  ;;  %v4393_v33 = vld [vmem:[#allocation7 + $0x394] ss:$40 sps:$4 sm:$0xff]  }
 0x20b   : > { %1823 = vmatprep.subr.bf16.mxu0 %v4312_v34  ;;  %v4418_v34 = vld [vmem:[#allocation8 + $0x78] ss:$20 sps:$4 sm:$0xff]  }
 0x20c   : > { %1863 = vmatpush1.bf16.msra.mxu1 %v4307_v35  ;;  %v4424_v35 = vld [vmem:[#allocation8 + $0xa4] ss:$20 sps:$4 sm:$0xff]  }
 0x20d   : > { %1864 = vmatprep.subr.bf16.mxu1 %v4315_v36  ;;  %v4391_v36 = vld [vmem:[#allocation7 + $0x390] ss:$40 sps:$4 sm:$0xff]  }
 0x20e   : > { %1824 = vmatpush1.bf16.msra.mxu0 %v4310_v37  ;;  %v4396_v37 = vld [vmem:[#allocation7 + $0x3e4] ss:$40 sps:$4 sm:$0xff]  }
 0x20f   : > { %1825 = vmatprep.subr.bf16.mxu0 %v4318_v38  ;;  %v4422_v38 = vld [vmem:[#allocation8 + $0xa0] ss:$20 sps:$4 sm:$0xff]  }
 0x210   : > { %1865 = vmatpush1.bf16.msra.mxu1 %v4313_v39  ;;  %v4428_v39 = vld [vmem:[#allocation8 + $0xcc] ss:$20 sps:$4 sm:$0xff]  }
 0x211   : > { %1866 = vmatprep.subr.bf16.mxu1 %v4321_v40  ;;  %v4394_v40 = vld [vmem:[#allocation7 + $0x3e0] ss:$40 sps:$4 sm:$0xff]  }
 0x212   : > { %1826 = vmatpush1.bf16.msra.mxu0 %v4316_v41  ;;  %v4399_v41 = vld [vmem:[#allocation7 + $0x434] ss:$40 sps:$4 sm:$0xff]  }
 0x213   : > { %1827 = vmatprep.subr.bf16.mxu0 %v4324_v42  ;;  %v4426_v42 = vld [vmem:[#allocation8 + $0xc8] ss:$20 sps:$4 sm:$0xff]  }
 0x214   : > { %1867 = vmatpush1.bf16.msra.mxu1 %v4319_v43  ;;  %v4432_v43 = vld [vmem:[#allocation8 + $0xf4] ss:$20 sps:$4 sm:$0xff]  }
 0x215   : > { %1868 = vmatprep.subr.bf16.mxu1 %v4327_v44  ;;  %v4397_v44 = vld [vmem:[#allocation7 + $0x430] ss:$40 sps:$4 sm:$0xff]  }
 0x216   : > { %1828 = vmatpush1.bf16.msra.mxu0 %v4322_v45  ;;  %v4402_v45 = vld [vmem:[#allocation7 + $0x484] ss:$40 sps:$4 sm:$0xff]  }
 0x217   : > { %1829 = vmatprep.subr.bf16.mxu0 %v4330_v46  ;;  %v4430_v46 = vld [vmem:[#allocation8 + $0xf0] ss:$20 sps:$4 sm:$0xff]  }
 0x218   : > { %1869 = vmatpush1.bf16.msra.mxu1 %v4325_v47  ;;  %v4400_v47 = vld [vmem:[#allocation7 + $0x480] ss:$40 sps:$4 sm:$0xff]  }
 0x219   : > { %1870 = vmatprep.subr.bf16.mxu1 %v4333_v50  ;;  %v4403_v50 = vld [vmem:[#allocation7 + $0x4d0] ss:$40 sps:$4 sm:$0xff]  }
 0x21a   : > { %1830 = vmatpush1.bf16.msra.mxu0 %v4328_v49  ;;  %v4405_v49 = vld [vmem:[#allocation7 + $0x4d4] ss:$40 sps:$4 sm:$0xff]  }
 0x21b   : > { %1831 = vmatprep.subr.bf16.mxu0 %v4336_v52  ;;  %v5081_v52 = vmov 0.0  }
 0x21c   : > { %1871 = vmatpush1.bf16.msra.mxu1 %v4331_v51  ;;  %v4409_v51 = vld [vmem:[#allocation8 + $0x10] ss:$20 sps:$4 sm:$0xff]  }
 0x21d   : > { %1872 = vmatprep.subr.bf16.mxu1 %v4339_v53  ;;  %v4413_v53 = vld [vmem:[#allocation8 + $0x38] ss:$20 sps:$4 sm:$0xff]  }
 0x21e   : > { %1832 = vmatpush1.bf16.msra.mxu0 %v4334_v54  ;;  %v4417_v54 = vld [vmem:[#allocation8 + $0x60] ss:$20 sps:$4 sm:$0xff]  }
 0x21f   : > { %1833 = vmatprep.subr.bf16.mxu0 %v4342_v55  ;;  %v4421_v55 = vld [vmem:[#allocation8 + $0x88] ss:$20 sps:$4 sm:$0xff]  }
 0x220   : > { %1873 = vmatpush1.bf16.msra.mxu1 %v4337_v56  ;;  %v4425_v56 = vld [vmem:[#allocation8 + $0xb0] ss:$20 sps:$4 sm:$0xff]  }
 0x221   : > { %1874 = vmatprep.subr.bf16.mxu1 %v4345_v57  ;;  %v4429_v57 = vld [vmem:[#allocation8 + $0xd8] ss:$20 sps:$4 sm:$0xff]  }
 0x222   : > { %1834 = vmatpush1.bf16.msra.mxu0 %v4340_v58  ;;  %v4433_v58 = vld [vmem:[#allocation8 + $0x100] ss:$20 sps:$4 sm:$0xff]  }
 0x223   : > { %1835 = vmatprep.subr.bf16.mxu0 %v4348_v59  ;;  %v4434_v59 = vld [vmem:[#allocation8 + $0x118] ss:$20 sps:$4 sm:$0xff]  }
 0x224   : > { %1875 = vmatpush1.bf16.msra.mxu1 %v4343_v60  ;;  %v4440_v60 = vld [vmem:[#allocation8 + $0xc] ss:$20 sps:$4 sm:$0xff]  }
 0x225   : > { %1876 = vmatprep.subr.bf16.mxu1 %v4351_v61  ;;  %v4437_v61 = vld [vmem:[#allocation8 + $0x128] ss:$20 sps:$4 sm:$0xff]  }
 0x226   : > { %1836 = vmatpush1.bf16.msra.mxu0 %v4346_v62  ;;  %v5082_v62 = vmov 0  }
 0x227   : > { %1837 = vmatprep.subr.bf16.mxu0 %v4354_v63  ;;  %v868_v63 = vlaneseq }
 0x228   : > { %1877 = vmatpush1.bf16.msra.mxu1 %v4349_v0 }
 0x229   : > { %1878 = vmatprep.subr.bf16.mxu1 %v4357_v1  ;;  %v5627_v0 = vshrl.u32 %v868_v63, 7 }
 0x22a   : > { %1838 = vmatpush1.bf16.msra.mxu0 %v4352_v2  ;;  %v704_v2 = vld [vmem:[%s5561_s23] sm:$0xff] }
 0x22b   : > { %1889 = vmatprep.subr.bf16.mxu0 %v4360_v4  ;;  %v5630_v1 = vsub.s32 0, %v5627_v0  ;;  %v5634_v4 = vsub.s32 1, %v5627_v0 }
 0x22c   : > { %1879 = vmatpush1.bf16.msra.mxu1 %v4355_v5  ;;  %v5637_v5 = vsub.s32 2, %v5627_v0 }
 0x22d   : > { %1840 = vmatmul.mubr.bf16.vlgmr.msra.gmra.mrb[4].mxu0 %v5604_v3  ;;  %2218 = vmatprep.subr.bf16.mxu1 %v4408_v22 }
 0x22e   : > { %1890 = vmatpush1.bf16.msra.mxu0 %v4358_v6  ;;  %1921 = vmatprep.mubr.bf16.mxu0 %v5600_v48  ;;  %v4376_v48 = vld [vmem:[#allocation7 + $0x200] ss:$40 sps:$4 sm:$0xff]   ;;  %v5640_v6 = vsub.s32 3, %v5627_v0 }
 0x22f   : > { %1881 = vmatmul.mubr.bf16.vlgmr.msra.gmra.mrb[4].mxu1 %v5604_v3  ;;  %1891 = vmatprep.subr.bf16.mxu0 %v4363_v7  ;;  %v871_v7 = vrot.slane %v704_v2, %v5630_v1 }
 0x230   : > { %2219 = vmatpush1.bf16.msra.mxu1 %v4406_v21  ;;  %2250 = vmatprep.mubr.bf16.mxu1 %v5082_v62 }
 0x231   : > { %2220 = vmatprep.subr.bf16.mxu1 %v4412_v23 }
 0x232   : > { %1892 = vmatpush1.bf16.msra.mxu0 %v4361_v8  ;;  %v875_v8 = vrot.slane %v704_v2, %v5634_v4 }
 0x233   : > { %1893 = vmatprep.subr.bf16.mxu0 %v4366_v9  ;;  %v879_v9 = vrot.slane %v704_v2, %v5637_v5 }
 0x234   : > { %2221 = vmatpush1.bf16.msra.mxu1 %v4410_v26  ;;  %v890_v26 = vsub.s32 5, %v5627_v0 }
 0x235   : > { %2222 = vmatprep.subr.bf16.mxu1 %v4416_v27  ;;  %v894_v27 = vsub.s32 6, %v5627_v0 }
 0x236   : > { %1894 = vmatpush1.bf16.msra.mxu0 %v4364_v10 }
 0x237   : > { %1895 = vmatprep.subr.bf16.mxu0 %v4369_v11  ;;  %v883_v11 = vrot.slane %v704_v2, %v5640_v6 }
 0x238   : > { %2223 = vmatpush1.bf16.msra.mxu1 %v4414_v30  ;;  %v891_v30 = vrot.slane %v704_v2, %v890_v26  ;;  %v4482_v26 = vld [vmem:[#allocation16 + $0xa8] ss:$20 sps:$4 sm:$0xff]  }
 0x239   : > { %2224 = vmatprep.subr.bf16.mxu1 %v4420_v31  ;;  %v895_v31 = vrot.slane %v704_v2, %v894_v27  ;;  %v4487_v27 = vld [vmem:[#allocation16 + $0xd4] ss:$20 sps:$4 sm:$0xff]  }
 0x23a   : > { %1896 = vmatpush1.bf16.msra.mxu0 %v4367_v12 }
 0x23b   : > { %1897 = vmatprep.subr.bf16.mxu0 %v4372_v13 }
 0x23c   : > { %2225 = vmatpush1.bf16.msra.mxu1 %v4418_v34 }
 0x23d   : > { %2226 = vmatprep.subr.bf16.mxu1 %v4424_v35 }
 0x23e   : > { %1898 = vmatpush1.bf16.msra.mxu0 %v4370_v14 }
 0x23f   : > { %1899 = vmatprep.subr.bf16.mxu0 %v4375_v15 }
 0x240   : > { %2227 = vmatpush1.bf16.msra.mxu1 %v4422_v38 }
 0x241   : > { %2228 = vmatprep.subr.bf16.mxu1 %v4428_v39 }
 0x242   : > { %1900 = vmatpush1.bf16.msra.mxu0 %v4373_v16 }
 0x243   : > { %1901 = vmatprep.subr.bf16.mxu0 %v4378_v17 }
 0x244   : > { %2229 = vmatpush1.bf16.msra.mxu1 %v4426_v42 }
 0x245   : > { %2230 = vmatprep.subr.bf16.mxu1 %v4432_v43 }
 0x246   : > { %1902 = vmatpush1.bf16.msra.mxu0 %v4376_v48 }
 0x247   : > { %1903 = vmatprep.subr.bf16.mxu0 %v4381_v18 }
 0x248   : > { %2231 = vmatpush1.bf16.msra.mxu1 %v4430_v46 }
 0x24a   : > { %1904 = vmatpush1.bf16.msra.mxu0 %v4379_v19 }
 0x24b   : > { %1905 = vmatprep.subr.bf16.mxu0 %v4384_v20 }
 0x24e   : > { %1906 = vmatpush1.bf16.msra.mxu0 %v4382_v24 }
 0x24f   : > { %1907 = vmatprep.subr.bf16.mxu0 %v4387_v25  ;;  %v5647_v25 = vsub.s32 4, %v5627_v0 }
 0x252   : > { %1908 = vmatpush1.bf16.msra.mxu0 %v4385_v28  ;;  %v898_v28 = vsub.s32 7, %v5627_v0 }
 0x253   : > { %1909 = vmatprep.subr.bf16.mxu0 %v4390_v29  ;;  %v887_v29 = vrot.slane %v704_v2, %v5647_v25 }
 0x256   : > { %1910 = vmatpush1.bf16.msra.mxu0 %v4388_v32 }
 0x257   : > { %1911 = vmatprep.subr.bf16.mxu0 %v4393_v33  ;;  %v899_v33 = vrot.slane %v704_v2, %v898_v28  ;;  %v4454_v2 = vld [vmem:[#allocation8 + $0xa8] ss:$20 sps:$4 sm:$0xff]   ;;  %v4485_v28 = vld [vmem:[#allocation16 + $0xd0] ss:$20 sps:$4 sm:$0xff]  }
 0x25a   : > { %1912 = vmatpush1.bf16.msra.mxu0 %v4391_v36 }
 0x25b   : > { %1913 = vmatprep.subr.bf16.mxu0 %v4396_v37 }
 0x25e   : > { %1914 = vmatpush1.bf16.msra.mxu0 %v4394_v40 }
 0x25f   : > { %1915 = vmatprep.subr.bf16.mxu0 %v4399_v41 }
 0x262   : > { %1916 = vmatpush1.bf16.msra.mxu0 %v4397_v44  ;;  %v4438_v44 = vld [vmem:[#allocation8 + $0x8] ss:$20 sps:$4 sm:$0xff]  }
 0x263   : > { %1917 = vmatprep.subr.bf16.mxu0 %v4402_v45  ;;  %v4441_v45 = vld [vmem:[#allocation11] sm:$0xff]  }
 0x266   : > { %1918 = vmatpush1.bf16.msra.mxu0 %v4400_v47 }
 0x267   : > { %1919 = vmatprep.subr.bf16.mxu0 %v4405_v49 }
 0x26a   : > { %1920 = vmatpush1.bf16.msra.mxu0 %v4403_v50  ;;  %v4444_v50 = vld [vmem:[#allocation8 + $0x34] ss:$20 sps:$4 sm:$0xff]  }
 0x26b   : > { %3849 = vmatprep.subr.bf16.mxu0 %v5081_v52 }
 0x26d   : > { %1922 = vmatmul.mubr.bf16.vlgmr.msra.gmra.mrb[8].mxu0 %v5604_v3  ;;  %v4436_v3 = vld [vmem:[#allocation8 + $0x11c] ss:$20 sps:$4 sm:$0xff]  }
 0x26e   : > { %3850 = vmatpush3.bf16.msra.mxu0 %v4409_v51  ;;  %2232 = vmatprep.subr.bf16.mxu1 %v4436_v3  ;;  %v4449_v3 = vld [vmem:[#allocation11 + $0x10] sm:$0xff]  }
 0x26f   : > { %3851 = vmatprep.subr.bf16.mxu0 %v5081_v52  ;;  %2233 = vmatpush1.bf16.msra.mxu1 %v4434_v59  ;;  %v4450_v59 = vld [vmem:[#allocation8 + $0x80] ss:$20 sps:$4 sm:$0xff]  }
 0x270   : > { %2259 = vmatprep.subr.bf16.mxu1 %v4440_v60  ;;  %3865 = vmatprep.mubr.msk.bf16.mxu0 %vm5083_vm0, %v5081_v52  ;;  %v4453_v60 = vld [vmem:[#allocation11 + $0x18] sm:$0xff]  }
 0x272   : > { %3852 = vmatpush3.bf16.msra.mxu0 %v4413_v53 }
 0x273   : > { %3853 = vmatprep.subr.bf16.mxu0 %v5081_v52 }
 0x276   : > { %3854 = vmatpush3.bf16.msra.mxu0 %v4417_v54  ;;  %v4442_v54 = vld [vmem:[#allocation8 + $0x30] ss:$20 sps:$4 sm:$0xff]  }
 0x277   : > { %3855 = vmatprep.subr.bf16.mxu0 %v5081_v52 }
 0x27a   : > { %3856 = vmatpush3.bf16.msra.mxu0 %v4421_v55  ;;  %v4445_v55 = vld [vmem:[#allocation11 + $0x8] sm:$0xff]  }
 0x27b   : > { %3857 = vmatprep.subr.bf16.mxu0 %v5081_v52 }
 0x27e   : > { %3858 = vmatpush3.bf16.msra.mxu0 %v4425_v56  ;;  %v4448_v56 = vld [vmem:[#allocation8 + $0x5c] ss:$20 sps:$4 sm:$0xff]  }
 0x27f   : > { %3859 = vmatprep.subr.bf16.mxu0 %v5081_v52 }
 0x282   : > { %3860 = vmatpush3.bf16.msra.mxu0 %v4429_v57  ;;  %v4446_v57 = vld [vmem:[#allocation8 + $0x58] ss:$20 sps:$4 sm:$0xff]  }
 0x283   : > { %3861 = vmatprep.subr.bf16.mxu0 %v5081_v52 }
 0x286   : > { %3862 = vmatpush3.bf16.msra.mxu0 %v4433_v58  ;;  %v4452_v58 = vld [vmem:[#allocation8 + $0x84] ss:$20 sps:$4 sm:$0xff]  }
 0x287   : > { %3863 = vmatprep.subr.bf16.mxu0 %v5081_v52 }
 0x28a   : > { %3864 = vmatpush3.bf16.msra.mxu0 %v4437_v61  ;;  %v4456_v61 = vld [vmem:[#allocation8 + $0xac] ss:$20 sps:$4 sm:$0xff]  }
 0x28b   : > { %3889 = vmatprep.subr.bf16.mxu0 %v5081_v52 }
 0x2c0   : > { %v1759_v10 = vpop.f32.mrb[0].mxu0 }
 0x2c1   : > { %v1760_v12 = vadd.f32 %v1759_v10, %v871_v7  ;;  %v1761_v13 = vpop.f32.mrb[1].mxu0  ;;  %v4457_v7 = vld [vmem:[#allocation11 + $0x20] sm:$0xff]   ;;  %v4461_v10 = vld [vmem:[#allocation11 + $0x28] sm:$0xff]  }
 0x2c2   : > { %v1762_v14 = vadd.f32 %v1761_v13, %v875_v8  ;;  %v1763_v15 = vpop.f32.mrb[2].mxu0  ;;  %v1800_v16 = vpop.f32.mrb[0].mxu1  ;;  %v4460_v8 = vld [vmem:[#allocation8 + $0xd4] ss:$20 sps:$4 sm:$0xff]  }
 0x2c3   : > { %v1764_v17 = vpop.f32.mrb[3].mxu0  ;;  %v1801_v48 = vadd.f32 %v1800_v16, %v879_v9  ;;  %v1802_v18 = vpop.f32.mrb[1].mxu1  ;;  %v4458_v9 = vld [vmem:[#allocation8 + $0xd0] ss:$20 sps:$4 sm:$0xff]   ;;  %v4465_v13 = vld [vmem:[#allocation11 + $0x30] sm:$0xff]  }
 0x2c4   : > { %v1930_v19 = vmax.f32 %v1760_v12, %v1762_v14  ;;  %v1803_v20 = vadd.f32 %v1802_v18, %v883_v11  ;;  %v1804_v21 = vpop.f32.mrb[2].mxu1  ;;  %v4464_v11 = vld [vmem:[#allocation8 + $0xfc] ss:$20 sps:$4 sm:$0xff]   ;;  %v4462_v12 = vld [vmem:[#allocation8 + $0xf8] ss:$20 sps:$4 sm:$0xff]  }
 0x2c5   : > { %v1805_v22 = vpop.f32.mrb[3].mxu1  ;;  %v4468_v14 = vld [vmem:[#allocation8 + $0x124] ss:$20 sps:$4 sm:$0xff]   ;;  %v4466_v15 = vld [vmem:[#allocation8 + $0x120] ss:$20 sps:$4 sm:$0xff]  }
 0x2c6   : > { %v1931_v23 = vmax.f32 %v1930_v19, %v1801_v48  ;;  %v4469_v16 = vld [vmem:[#allocation11 + $0x38] sm:$0xff]   ;;  %v4472_v17 = vld [vmem:[#allocation16 + $0xc] ss:$20 sps:$4 sm:$0xff]   ;;  %v4473_v19 = vld [vmem:[#allocation16 + $0x30] ss:$20 sps:$4 sm:$0xff]  }
 0x2c7   : > { %v4470_v48 = vld [vmem:[#allocation16 + $0x8] ss:$20 sps:$4 sm:$0xff]   ;;  %v4476_v21 = vld [vmem:[#allocation16 + $0x58] ss:$20 sps:$4 sm:$0xff]  }
 0x2c8   : > { %v1932_v24 = vmax.f32 %v1931_v23, %v1803_v20  ;;  %v4475_v18 = vld [vmem:[#allocation16 + $0x34] ss:$20 sps:$4 sm:$0xff]   ;;  %v4478_v20 = vld [vmem:[#allocation16 + $0x5c] ss:$20 sps:$4 sm:$0xff]   ;;  %v4481_v22 = vld [vmem:[#allocation16 + $0x84] ss:$20 sps:$4 sm:$0xff]  }
 0x2c9   : > { %v4479_v23 = vld [vmem:[#allocation16 + $0x80] ss:$20 sps:$4 sm:$0xff]  }
 0x300   : > { %v1841_v32 = vpop.f32.mrb[4].mxu0 }
 0x301   : > { %v1842_v34 = vadd.f32 %v1841_v32, %v887_v29  ;;  %v1843_v35 = vpop.f32.mrb[5].mxu0  ;;  %v4490_v29 = vld [vmem:[#allocation16 + $0xfc] ss:$20 sps:$4 sm:$0xff]  }
 0x302   : > { %v1844_v36 = vadd.f32 %v1843_v35, %v891_v30  ;;  %v1882_v37 = vpop.f32.mrb[4].mxu1  ;;  %v1845_v38 = vpop.f32.mrb[6].mxu0  ;;  %v705_v30 = vld [vmem:[%s5561_s23 + $0x8] sm:$0x3]  ;;  %s4918_s23 = scalar_lea.vmem %s3235_s21, 16 }
 0x303   : > { %v1933_v39 = vmax.f32 %v1932_v24, %v1842_v34  ;;  %v1883_v40 = vadd.f32 %v1882_v37, %v895_v31  ;;  %v1846_v41 = vpop.f32.mrb[7].mxu0  ;;  %v1884_v42 = vpop.f32.mrb[5].mxu1  ;;  %v4484_v24 = vld [vmem:[#allocation16 + $0xac] ss:$20 sps:$4 sm:$0xff]   ;;  %v903_v32 = vrot.slane %v705_v30, %v5630_v1  ;;  %v907_v34 = vrot.slane %v705_v30, %v5634_v4  ;;  %p4919_p11 = scmp.ne.s32.totalorder %s3235_s21, %s4918_s23  ;;  %p4926_p8 = scmp.lt.s32.totalorder %s4924_s6, %s4918_s23 }
 0x304   : > { %v1885_v43 = vadd.f32 %v1884_v42, %v899_v33  ;;  %v1886_v46 = vpop.f32.mrb[6].mxu1  ;;  %v4488_v31 = vld [vmem:[#allocation16 + $0xf8] ss:$20 sps:$4 sm:$0xff]   ;;  %v4502_v30 = vld [vmem:[#allocation16] ss:$20 sps:$4 sm:$0xff]  }
 0x305   : > { %v5653_v47 = vpack.c.bf16 %v1933_v39, %v1933_v39  ;;  %v2575_v49 = vmax.f32 %v1844_v36, %v1883_v40  ;;  %v1887_v51 = vpop.f32.mrb[7].mxu1  ;;  %v4493_v33 = vld [vmem:[#allocation16 + $0x124] ss:$20 sps:$4 sm:$0xff]   ;;  %v4491_v36 = vld [vmem:[#allocation16 + $0x120] ss:$20 sps:$4 sm:$0xff]   ;;  %p4920_p10 = pnand %p4919_p11, %p5916_p13  ;;  %p4927_p3 = por %p4926_p8, %p4925_p9 }
 0x306   : > { %v4495_v46 = vld [vmem:[#allocation13 + $0x8] sm:$0xff]  }
 0x307   : > { %v5655_v53 = vmax.f32 %v2575_v49, %v1885_v43  ;;  %2251 = vmatmul.mubr.bf16.vlgmr.msra.gmra.mrb[8].mxu1 %v5653_v47  ;;  %3866 = vmatmul.mubr.bf16.vlgmr.msra.gmra.mrb[12].mxu0 %v5653_v47  ;;  %v4497_v49 = vld [vmem:[#allocation13 + $0x18] sm:$0xff]   ;;  %v4499_v51 = vld [vmem:[#allocation13 + $0x28] sm:$0xff]   ;;  %p4921_p1 = pneg %p4920_p10 }
 0x308   : > { %2260 = vmatpush1.bf16.msra.mxu1 %v4438_v44  ;;  %3890 = vmatpush3.bf16.msra.mxu0 %v4441_v45  ;;  %v4494_v45 = vld [vmem:[#allocation13] sm:$0xff]  }
 0x309   : > { %2261 = vmatprep.subr.bf16.mxu1 %v4444_v50  ;;  %3891 = vmatprep.subr.bf16.mxu0 %v5081_v52  ;;  %v4498_v50 = vld [vmem:[#allocation13 + $0x20] sm:$0xff]   ;;  %p4928_p12 = pnand %p4927_p3, %p4921_p1 }
 0x30a   : > { %2291 = vmatprep.mubr.bf16.mxu1 %v5082_v62  ;;  %3905 = vmatprep.mubr.msk.bf16.mxu0 %vm5083_vm0, %v5081_v52 }
 0x30c   : > { %2262 = vmatpush1.bf16.msra.mxu1 %v4442_v54  ;;  %3892 = vmatpush3.bf16.msra.mxu0 %v4445_v55  ;;  %v4501_v54 = vld [vmem:[#allocation13 + $0x38] sm:$0xff]  }
 0x30d   : > { %2263 = vmatprep.subr.bf16.mxu1 %v4448_v56  ;;  %3893 = vmatprep.subr.bf16.mxu0 %v5081_v52  ;;  %v4504_v55 = vld [vmem:[#allocation16 + $0x4] ss:$20 sps:$4 sm:$0xff]  }
 0x30e   : > { %v1983_v56 = vld [vmem:[#allocation10] sm:$0x1f] }
 0x310   : > { %2264 = vmatpush1.bf16.msra.mxu1 %v4446_v57  ;;  %3894 = vmatpush3.bf16.msra.mxu0 %v4449_v3  ;;  %v1988_v57 = vrot.slane %v1983_v56, %v5630_v1  ;;  %v1992_v3 = vrot.slane %v1983_v56, %v5634_v4 }
 0x311   : > { %2265 = vmatprep.subr.bf16.mxu1 %v4452_v58  ;;  %3895 = vmatprep.subr.bf16.mxu0 %v5081_v52 }
 0x314   : > { %2266 = vmatpush1.bf16.msra.mxu1 %v4450_v59  ;;  %3896 = vmatpush3.bf16.msra.mxu0 %v4453_v60 }
 0x315   : > { %2267 = vmatprep.subr.bf16.mxu1 %v4456_v61  ;;  %3897 = vmatprep.subr.bf16.mxu0 %v5081_v52 }
 0x318   : > { %2268 = vmatpush1.bf16.msra.mxu1 %v4454_v2  ;;  %3898 = vmatpush3.bf16.msra.mxu0 %v4457_v7 }
 0x319   : > { %2269 = vmatprep.subr.bf16.mxu1 %v4460_v8  ;;  %3899 = vmatprep.subr.bf16.mxu0 %v5081_v52 }
 0x31c   : > { %2270 = vmatpush1.bf16.msra.mxu1 %v4458_v9  ;;  %3900 = vmatpush3.bf16.msra.mxu0 %v4461_v10 }
 0x31d   : > { %2271 = vmatprep.subr.bf16.mxu1 %v4464_v11  ;;  %3901 = vmatprep.subr.bf16.mxu0 %v5081_v52 }
 0x320   : > { %2272 = vmatpush1.bf16.msra.mxu1 %v4462_v12  ;;  %3902 = vmatpush3.bf16.msra.mxu0 %v4465_v13  ;;  %v1996_v13 = vrot.slane %v1983_v56, %v5637_v5 }
 0x321   : > { %2273 = vmatprep.subr.bf16.mxu1 %v4468_v14  ;;  %3903 = vmatprep.subr.bf16.mxu0 %v5081_v52  ;;  %v2000_v14 = vrot.slane %v1983_v56, %v5640_v6 }
 0x324   : > { %2274 = vmatpush1.bf16.msra.mxu1 %v4466_v15  ;;  %3904 = vmatpush3.bf16.msra.mxu0 %v4469_v16 }
 0x325   : > { %2904 = vmatprep.subr.bf16.mxu0 %v4472_v17  ;;  %3869 = vmatprep.subr.bf16.mxu1 %v5081_v52  ;;  %v2004_v17 = vrot.slane %v1983_v56, %v5647_v25  ;;  %v4530_v56 = vld [vmem:[#allocation16 + $0xb0] ss:$20 sps:$4 sm:$0xff]  }
 0x327   : > { %2292 = vmatmul.mubr.bf16.vlgmr.msra.gmra.mrb[12].mxu1 %v5653_v47  ;;  %3906 = vmatmul.mubr.bf16.vlgmr.msra.gmra.mrb[16].mxu0 %v5653_v47  ;;  %v4496_v47 = vld [vmem:[#allocation13 + $0x10] sm:$0xff]  }
 0x328   : > { %2905 = vmatpush1.bf16.msra.mxu0 %v4470_v48  ;;  %2936 = vmatprep.mubr.bf16.mxu0 %v5082_v62 }
 0x329   : > { %2906 = vmatprep.subr.bf16.mxu0 %v4475_v18  ;;  %3885 = vmatprep.mubr.msk.bf16.mxu1 %vm5083_vm0, %v5081_v52 }
 0x32a   : > { %3870 = vmatpush3.bf16.msra.mxu1 %v4494_v45 }
 0x32b   : > { %3871 = vmatprep.subr.bf16.mxu1 %v5081_v52 }
 0x32c   : > { %2907 = vmatpush1.bf16.msra.mxu0 %v4473_v19 }
 0x32d   : > { %2908 = vmatprep.subr.bf16.mxu0 %v4478_v20 }
 0x32e   : > { %3872 = vmatpush3.bf16.msra.mxu1 %v4495_v46 }
 0x32f   : > { %3873 = vmatprep.subr.bf16.mxu1 %v5081_v52 }
 0x330   : > { %2909 = vmatpush1.bf16.msra.mxu0 %v4476_v21 }
 0x331   : > { %2910 = vmatprep.subr.bf16.mxu0 %v4481_v22 }
 0x332   : > { %3874 = vmatpush3.bf16.msra.mxu1 %v4496_v47 }
 0x333   : > { %3875 = vmatprep.subr.bf16.mxu1 %v5081_v52 }
 0x334   : > { %2911 = vmatpush1.bf16.msra.mxu0 %v4479_v23 }
 0x335   : > { %2912 = vmatprep.subr.bf16.mxu0 %v4484_v24 }
 0x336   : > { %3876 = vmatpush3.bf16.msra.mxu1 %v4497_v49  ;;  %v4523_v49 = vld [vmem:[#allocation16 + $0x118] ss:$20 sps:$4 sm:$0xff]  }
 0x337   : > { %3877 = vmatprep.subr.bf16.mxu1 %v5081_v52 }
 0x338   : > { %2913 = vmatpush1.bf16.msra.mxu0 %v4482_v26 }
 0x339   : > { %2914 = vmatprep.subr.bf16.mxu0 %v4487_v27 }
 0x33a   : > { %3878 = vmatpush3.bf16.msra.mxu1 %v4498_v50 }
 0x33b   : > { %3879 = vmatprep.subr.bf16.mxu1 %v5081_v52 }
 0x33c   : > { %2915 = vmatpush1.bf16.msra.mxu0 %v4485_v28 }
 0x33d   : > { %2916 = vmatprep.subr.bf16.mxu0 %v4490_v29 }
 0x33e   : > { %3880 = vmatpush3.bf16.msra.mxu1 %v4499_v51  ;;  %v4526_v51 = vld [vmem:[#allocation16 + $0x10] ss:$20 sps:$4 sm:$0xff]  }
 0x33f   : > { %3881 = vmatprep.subr.bf16.mxu1 %v5081_v52 }
 0x340   : > { %v1923_v35 = vpop.f32.mrb[8].mxu0  ;;  %2917 = vmatpush1.bf16.msra.mxu0 %v4488_v31 }
 0x341   : > { %v1924_v37 = vadd.f32 %v1923_v35, %v903_v32  ;;  %v1925_v38 = vpop.f32.mrb[9].mxu0  ;;  %2918 = vmatprep.subr.bf16.mxu0 %v4493_v33  ;;  %v4507_v32 = vld [vmem:[#allocation16 + $0x2c] ss:$20 sps:$4 sm:$0xff]   ;;  %v4505_v33 = vld [vmem:[#allocation16 + $0x28] ss:$20 sps:$4 sm:$0xff]  }
 0x342   : > { %v1926_v39 = vadd.f32 %v1925_v38, %v907_v34  ;;  %v1927_v40 = vpop.f32.mrb[10].mxu0  ;;  %v4510_v34 = vld [vmem:[#allocation16 + $0x54] ss:$20 sps:$4 sm:$0xff]   ;;  %v4508_v35 = vld [vmem:[#allocation16 + $0x50] ss:$20 sps:$4 sm:$0xff]  }
 0x343   : > { %v2577_v41 = vmax.f32 %v5655_v53, %v1924_v37  ;;  %v1928_v42 = vpop.f32.mrb[11].mxu0  ;;  %v4500_v53 = vld [vmem:[#allocation13 + $0x30] sm:$0xff]   ;;  %v4516_v38 = vld [vmem:[#allocation16 + $0xa4] ss:$20 sps:$4 sm:$0xff]  }
 0x344   : > { %2919 = vmatpush1.bf16.msra.mxu0 %v4491_v36  ;;  %3882 = vmatpush3.bf16.msra.mxu1 %v4500_v53  ;;  %v4513_v36 = vld [vmem:[#allocation16 + $0x7c] ss:$20 sps:$4 sm:$0xff]   ;;  %v4511_v37 = vld [vmem:[#allocation16 + $0x78] ss:$20 sps:$4 sm:$0xff]   ;;  %v4522_v42 = vld [vmem:[#allocation16 + $0xf4] ss:$20 sps:$4 sm:$0xff]  }
 0x345   : > { %v2578_v43 = vmax.f32 %v2577_v41, %v1926_v39  ;;  %3929 = vmatprep.subr.bf16.mxu0 %v5081_v52  ;;  %3883 = vmatprep.subr.bf16.mxu1 %v5081_v52  ;;  %v4514_v39 = vld [vmem:[#allocation16 + $0xa0] ss:$20 sps:$4 sm:$0xff]   ;;  %v4517_v41 = vld [vmem:[#allocation16 + $0xc8] ss:$20 sps:$4 sm:$0xff]   ;;  %v4527_v53 = vld [vmem:[#allocation16 + $0x38] ss:$20 sps:$4 sm:$0xff]  }
 0x346   : > { %v4519_v40 = vld [vmem:[#allocation16 + $0xcc] ss:$20 sps:$4 sm:$0xff]  }
 0x347   : > { %v5680_v44 = vpack.c.bf16 %v2578_v43, %v2578_v43  ;;  %v4525_v43 = vld [vmem:[#allocation16 + $0x11c] ss:$20 sps:$4 sm:$0xff]  }
 0x348   : > { %3884 = vmatpush3.bf16.msra.mxu1 %v4501_v54  ;;  %v4528_v54 = vld [vmem:[#allocation16 + $0x60] ss:$20 sps:$4 sm:$0xff]  }
 0x349   : > { %2937 = vmatmul.mubr.bf16.vlgmr.msra.gmra.mrb[20].mxu0 %v5680_v44  ;;  %2863 = vmatprep.subr.bf16.mxu1 %v4504_v55  ;;  %v4529_v55 = vld [vmem:[#allocation16 + $0x88] ss:$20 sps:$4 sm:$0xff]  }
 0x34a   : > { %3945 = vmatprep.mubr.msk.bf16.mxu0 %vm5083_vm0, %v5081_v52 }
 0x3da   : > { %v2252_v58 = vpop.f32.mrb[8].mxu1  ;;  %v2334_v59 = vpop.f32.mrb[12].mxu0 }
 0x3db   : > { %v2253_v60 = vadd.f32 %v2252_v58, %v1988_v57  ;;  %v2254_v61 = vpop.f32.mrb[9].mxu1  ;;  %v3867_v2 = vpop.f32.mrb[13].mxu0  ;;  %v2335_v27 = vadd.f32 %v2334_v59, %v2004_v17  ;;  %v4531_v57 = vld [vmem:[#allocation16 + $0xd8] ss:$20 sps:$4 sm:$0xff]   ;;  %v4533_v58 = vld [vmem:[#allocation16 + $0x128] ss:$20 sps:$4 sm:$0xff]  }
 0x3dc   : > { %v2255_v7 = vadd.f32 %v2254_v61, %v1992_v3  ;;  %v2256_v8 = vpop.f32.mrb[10].mxu1  ;;  %v2337_v9 = vpop.f32.mrb[14].mxu0  ;;  %v4532_v3 = vld [vmem:[#allocation16 + $0x100] ss:$20 sps:$4 sm:$0xff]   ;;  %v4534_v59 = vld [vmem:[#allocation19] sm:$0xff]  }
 0x3dd   : > { %v2257_v10 = vpop.f32.mrb[11].mxu1  ;;  %v3868_v11 = vpop.f32.mrb[15].mxu0  ;;  %v4536_v61 = vld [vmem:[#allocation19 + $0x10] sm:$0xff]   ;;  %v4537_v2 = vld [vmem:[#allocation19 + $0x18] sm:$0xff]   ;;  %v4539_v8 = vld [vmem:[#allocation19 + $0x28] sm:$0xff]  }
 0x3de   : > { %v2340_v12 = vmax.f32 %v2253_v60, %v2255_v7  ;;  %v4535_v60 = vld [vmem:[#allocation19 + $0x8] sm:$0xff]   ;;  %v4538_v7 = vld [vmem:[#allocation19 + $0x20] sm:$0xff]   ;;  %v4540_v9 = vld [vmem:[#allocation19 + $0x30] sm:$0xff]  }
 0x3df   : > { %v4541_v10 = vld [vmem:[#allocation19 + $0x38] sm:$0xff]   ;;  %v4542_v11 = vld [vmem:[#allocation20] sm:$0xff]   ;;  %v4547_v17 = vld [vmem:[#allocation20 + $0x28] sm:$0xff]  }
 0x3e0   : > { %3930 = vmatpush3.bf16.msra.mxu0 %v4542_v11 }
 0x3e1   : > { %3931 = vmatprep.subr.bf16.mxu0 %v5081_v52 }
 0x3fa   : > { %v2293_v15 = vpop.f32.mrb[12].mxu1  ;;  %v5696_v16 = vpop.f32.mrb[16].mxu0 }
 0x3fb   : > { %v2294_v48 = vadd.f32 %v2293_v15, %v1996_v13  ;;  %v2295_v18 = vpop.f32.mrb[13].mxu1  ;;  %v3907_v19 = vpop.f32.mrb[17].mxu0  ;;  %v4544_v13 = vld [vmem:[#allocation20 + $0x10] sm:$0xff]   ;;  %v4546_v15 = vld [vmem:[#allocation20 + $0x20] sm:$0xff]  }
 0x3fc   : > { %v2296_v20 = vadd.f32 %v2295_v18, %v2000_v14  ;;  %v2297_v21 = vpop.f32.mrb[14].mxu1  ;;  %v2550_v22 = vpop.f32.mrb[18].mxu0  ;;  %v4545_v14 = vld [vmem:[#allocation20 + $0x18] sm:$0xff]  }
 0x3fd   : > { %v2341_v23 = vmax.f32 %v2340_v12, %v2294_v48  ;;  %v2298_v24 = vpop.f32.mrb[15].mxu1  ;;  %v3908_v26 = vpop.f32.mrb[19].mxu0  ;;  %v4543_v12 = vld [vmem:[#allocation20 + $0x8] sm:$0xff]   ;;  %v4549_v48 = vld [vmem:[#allocation20 + $0x38] sm:$0xff]  }
 0x3fe   : > { %3932 = vmatpush3.bf16.msra.mxu0 %v4543_v12  ;;  %v3732_v19 = vld [vmem:[#allocation14] ss:$0 sm:$0xff] }
 0x3ff   : > { %v2342_v28 = vmax.f32 %v2341_v23, %v2296_v20  ;;  %3933 = vmatprep.subr.bf16.mxu0 %v5081_v52 }
 0x401   : > { %v2343_v29 = vmax.f32 %v2342_v28, %v2335_v27  ;;  %v2628_v27 = vld [vmem:[#allocation17] sm:$0x1f] }
 0x402   : > { %3934 = vmatpush3.bf16.msra.mxu0 %v4544_v13  ;;  %v2633_v28 = vrot.slane %v2628_v27, %v5630_v1  ;;  %v2649_v1 = vrot.slane %v2628_v27, %v5647_v25 }
 0x403   : > { %v2360_v31 = vpack.c.bf16 %v2343_v29, %v2343_v29  ;;  %3935 = vmatprep.subr.bf16.mxu0 %v5081_v52  ;;  %v2637_v29 = vrot.slane %v2628_v27, %v5634_v4 }
 0x405   : > { %3886 = vmatmul.mubr.bf16.vlgmr.msra.gmra.mrb[16].mxu1 %v2360_v31 }
 0x406   : > { %2864 = vmatpush1.bf16.msra.mxu1 %v4502_v30  ;;  %2895 = vmatprep.mubr.bf16.mxu1 %v5082_v62  ;;  %v4520_v62 = vld [vmem:[#allocation16 + $0xf0] ss:$20 sps:$4 sm:$0xff]  }
 0x407   : > { %2865 = vmatprep.subr.bf16.mxu1 %v4507_v32  ;;  %3936 = vmatpush3.bf16.msra.mxu0 %v4545_v14 }
 0x408   : > { %3937 = vmatprep.subr.bf16.mxu0 %v5081_v52 }
 0x40a   : > { %2866 = vmatpush1.bf16.msra.mxu1 %v4505_v33 }
 0x40b   : > { %2867 = vmatprep.subr.bf16.mxu1 %v4510_v34  ;;  %3938 = vmatpush3.bf16.msra.mxu0 %v4546_v15 }
 0x40c   : > { %3939 = vmatprep.subr.bf16.mxu0 %v5081_v52 }
 0x40e   : > { %2868 = vmatpush1.bf16.msra.mxu1 %v4508_v35 }
 0x40f   : > { %2869 = vmatprep.subr.bf16.mxu1 %v4513_v36  ;;  %3940 = vmatpush3.bf16.msra.mxu0 %v4547_v17 }
 0x410   : > { %3941 = vmatprep.subr.bf16.mxu0 %v5081_v52 }
 0x412   : > { %2870 = vmatpush1.bf16.msra.mxu1 %v4511_v37 }
 0x413   : > { %2871 = vmatprep.subr.bf16.mxu1 %v4516_v38 }
 0x416   : > { %2872 = vmatpush1.bf16.msra.mxu1 %v4514_v39 }
 0x417   : > { %2873 = vmatprep.subr.bf16.mxu1 %v4519_v40 }
 0x41a   : > { %2874 = vmatpush1.bf16.msra.mxu1 %v4517_v41 }
 0x41b   : > { %2875 = vmatprep.subr.bf16.mxu1 %v4522_v42 }
 0x41c   : > { %v5700_v45 = vpop.f32.mrb[20].mxu0 }
 0x41d   : > { %v5702_v46 = vpop.f32.mrb[21].mxu0 }
 0x41e   : > { %2876 = vmatpush1.bf16.msra.mxu1 %v4520_v62  ;;  %v2942_v47 = vpop.f32.mrb[22].mxu0 }
 0x41f   : > { %2877 = vmatprep.subr.bf16.mxu1 %v4525_v43  ;;  %v2943_v50 = vpop.f32.mrb[23].mxu0 }
 0x422   : > { %2878 = vmatpush1.bf16.msra.mxu1 %v4523_v49 }
 0x423   : > { %3909 = vmatprep.subr.bf16.mxu1 %v5081_v52 }
 0x425   : > { %2896 = vmatmul.mubr.bf16.vlgmr.msra.gmra.mrb[20].mxu1 %v5680_v44 }
 0x426   : > { %3910 = vmatpush3.bf16.msra.mxu1 %v4526_v51  ;;  %3925 = vmatprep.mubr.msk.bf16.mxu1 %vm5083_vm0, %v5081_v52  ;;  %v2567_v51 = vand.u32 127, %v868_v63 }
 0x427   : > { %3911 = vmatprep.subr.bf16.mxu1 %v5081_v52 }
 0x42a   : > { %3912 = vmatpush3.bf16.msra.mxu1 %v4527_v53 }
 0x42b   : > { %3913 = vmatprep.subr.bf16.mxu1 %v5081_v52 }
 0x42e   : > { %3914 = vmatpush3.bf16.msra.mxu1 %v4528_v54 }
 0x42f   : > { %3915 = vmatprep.subr.bf16.mxu1 %v5081_v52 }
 0x432   : > { %3916 = vmatpush3.bf16.msra.mxu1 %v4529_v55  ;;  %v3789_v55 = vld [vmem:[#allocation22] ss:$0 sm:$0xff] }
 0x433   : > { %3917 = vmatprep.subr.bf16.mxu1 %v5081_v52 }
 0x436   : > { %3918 = vmatpush3.bf16.msra.mxu1 %v4530_v56 }
 0x437   : > { %3919 = vmatprep.subr.bf16.mxu1 %v5081_v52 }
 0x43a   : > { %3920 = vmatpush3.bf16.msra.mxu1 %v4531_v57 }
 0x43b   : > { %3921 = vmatprep.subr.bf16.mxu1 %v5081_v52 }
 0x43e   : > { %3922 = vmatpush3.bf16.msra.mxu1 %v4532_v3 }
 0x43f   : > { %3923 = vmatprep.subr.bf16.mxu1 %v5081_v52 }
 0x442   : > { %3924 = vmatpush3.bf16.msra.mxu1 %v4533_v58 }
 0x443   : > { %3949 = vmatprep.subr.bf16.mxu1 %v5081_v52 }
 0x445   : > { %3926 = vmatmul.mubr.bf16.vlgmr.msra.gmra.mrb[24].mxu1 %v5680_v44 }
 0x446   : > { %3950 = vmatpush3.bf16.msra.mxu1 %v4534_v59  ;;  %3965 = vmatprep.mubr.msk.bf16.mxu1 %vm5083_vm0, %v5081_v52 }
 0x447   : > { %3951 = vmatprep.subr.bf16.mxu1 %v5081_v52 }
 0x44a   : > { %3952 = vmatpush3.bf16.msra.mxu1 %v4535_v60 }
 0x44b   : > { %3953 = vmatprep.subr.bf16.mxu1 %v5081_v52 }
 0x44e   : > { %3954 = vmatpush3.bf16.msra.mxu1 %v4536_v61 }
 0x44f   : > { %3955 = vmatprep.subr.bf16.mxu1 %v5081_v52 }
 0x452   : > { %3956 = vmatpush3.bf16.msra.mxu1 %v4537_v2 }
 0x453   : > { %3957 = vmatprep.subr.bf16.mxu1 %v5081_v52 }
 0x456   : > { %3958 = vmatpush3.bf16.msra.mxu1 %v4538_v7 }
 0x457   : > { %3959 = vmatprep.subr.bf16.mxu1 %v5081_v52 }
 0x45a   : > { %3960 = vmatpush3.bf16.msra.mxu1 %v4539_v8 }
 0x45b   : > { %3961 = vmatprep.subr.bf16.mxu1 %v5081_v52 }
 0x45e   : > { %3962 = vmatpush3.bf16.msra.mxu1 %v4540_v9 }
 0x45f   : > { %3963 = vmatprep.subr.bf16.mxu1 %v5081_v52 }
 0x462   : > { %3964 = vmatpush3.bf16.msra.mxu1 %v4541_v10 }
 0x465   : > { %3966 = vmatmul.mubr.bf16.vlgmr.msra.gmra.mrb[28].mxu1 %v5680_v44  ;;  %v4548_v44 = vld [vmem:[#allocation20 + $0x30] sm:$0xff]  }
 0x466   : > { %3942 = vmatpush3.bf16.msra.mxu0 %v4548_v44 }
 0x467   : > { %3943 = vmatprep.subr.bf16.mxu0 %v5081_v52  ;;  %v2641_v52 = vrot.slane %v2628_v27, %v5637_v5 }
 0x469   : > { %v2939_v36 = vadd.f32 %v5700_v45, %v2641_v52 }
 0x46a   : > { %3944 = vmatpush3.bf16.msra.mxu0 %v4549_v48 }
 0x4d8   : > { %v2459_v18 = vpop.f32.mrb[16].mxu1 }
 0x4d9   : > { %v2548_v20 = vadd.f32 %v5696_v16, %v2459_v18  ;;  %v3887_v21 = vpop.f32.mrb[17].mxu1  ;;  %v2645_v16 = vrot.slane %v2628_v27, %v5640_v6 }
 0x4da   : > { %v2462_v22 = vpop.f32.mrb[18].mxu1 }
 0x4db   : > { %v3888_v23 = vpop.f32.mrb[19].mxu1  ;;  %v2560_v24 = vadd.f32 %v3732_v19, %v2548_v20  ;;  %v2941_v38 = vadd.f32 %v5702_v46, %v2645_v16  ;;  %v2570_v46 = vsub.s32 %v2567_v51, %v5627_v0 }
 0x4dd   : > { %v2562_v26 = vsel %vm2561_vm1, %v2560_v24, -inf }
 0x4de   : > { %2563 = vmax.xlane.f32.xlu0 %v2562_v26 }
 0x4f8   : > { %v2897_v30 = vpop.f32.mrb[20].mxu1 }
 0x4f9   : > { %v2898_v31 = vadd.f32 %v2897_v30, %v2633_v28  ;;  %v2899_v32 = vpop.f32.mrb[21].mxu1 }
 0x4fa   : > { %v2900_v33 = vadd.f32 %v2899_v32, %v2637_v29  ;;  %v2901_v34 = vpop.f32.mrb[22].mxu1 }
 0x4fb   : > { %v2902_v35 = vpop.f32.mrb[23].mxu1 }
 0x4fc   : > { %v2985_v37 = vmax.f32 %v2898_v31, %v2900_v33 }
 0x4fe   : > { %v2986_v39 = vmax.f32 %v2985_v37, %v2939_v36 }
 0x500   : > { %v2987_v40 = vmax.f32 %v2986_v39, %v2941_v38 }
 0x518   : > { %v2979_v4 = vpop.f32.mrb[24].mxu1 }
 0x519   : > { %v2980_v41 = vadd.f32 %v2979_v4, %v2649_v1  ;;  %v3927_v5 = vpop.f32.mrb[25].mxu1 }
 0x51a   : > { %v2982_v42 = vpop.f32.mrb[26].mxu1 }
 0x51b   : > { %v2988_v62 = vmax.f32 %v2987_v40, %v2980_v41  ;;  %v3928_v43 = vpop.f32.mrb[27].mxu1 }
 0x51d   : > { %v3005_v6 = vpack.c.bf16 %v2988_v62, %v2988_v62 }
 0x51f   : > { %3946 = vmatmul.mubr.bf16.vlgmr.msra.gmra.mrb[24].mxu0 %v3005_v6 }
 0x538   : > { %v3192_v47 = vpop.f32.mrb[28].mxu1 }
 0x539   : > { %v3967_v49 = vpop.f32.mrb[29].mxu1 }
 0x53a   : > { %v3195_v50 = vpop.f32.mrb[30].mxu1 }
 0x53b   : > { %v3968_v45 = vpop.f32.mrb[31].mxu1 }
 0x56b   : > { %v2564_v25 = vpop.xlane.xlu0 %2563 }
 0x56c   : > { %v2571_v53 = vrot.slane %v2564_v25, %v2570_v46 }
 0x56e   : > { %2574 = vst.msk [vmem:[%s695_s28] sm:$0x1] %vm2573_vm2, %v2571_v53 }
 0x5f2   : > { %v3104_v54 = vpop.f32.mrb[24].mxu0 }
 0x5f3   : > { %v3193_v56 = vadd.f32 %v3192_v47, %v3104_v54  ;;  %v3947_v57 = vpop.f32.mrb[25].mxu0 }
 0x5f4   : > { %v3107_v3 = vpop.f32.mrb[26].mxu0 }
 0x5f5   : > { %v3948_v58 = vpop.f32.mrb[27].mxu0  ;;  %v3205_v59 = vadd.f32 %v3789_v55, %v3193_v56 }
 0x5f7   : > { %v3206_v63 = vsel %vm2561_vm1, %v3205_v59, -inf }
 0x5f8   : > { %3207 = vmax.xlane.f32.xlu0 %v3206_v63 }
 0x5f9   : > { %4931 = shalt.err (!%p4928_p12)
}
 0x5fa   : > { %s4932_s16 = scalar_lea.hbm %s5754_s7, 16  ;;  %s4936_s22 = scalar_lea.hbm %s5915_s14, 32 }
 0x5fb   : > { %p4933_p6 = scmp.ne.s32.totalorder %s5754_s7, %s4932_s16  ;;  %p4937_p5 = scmp.lt.u32.totalorder %s5754_s7, %s5915_s14 }
 0x5fc   : > { %p4938_p2 = scmp.lt.u32.totalorder %s4936_s22, %s4932_s16  ;;  %p4940_p11 = scmp.lt.u32.totalorder %s4932_s16, %s5754_s7 }
 0x5fd   : > { %p4934_p0 = pnand %p4933_p6, %p5916_p13 }
 0x5fe   : > { %p4939_p4 = por %p4938_p2, %p4937_p5 }
 0x5ff   : > { %p4935_p7 = pneg %p4934_p0 }
 0x600   : > { %p4941_p10 = por %p4940_p11, %p4939_p4 }
 0x602   : > { %p4942_p1 = pnand %p4941_p10, %p4935_p7 }
 0x604   : > { %4945 = shalt.err (!%p4942_p1)
}
 0x605   : > { %4020 = dma.vmem_to_hbm [thread:$0]  (%p5916_p13), %s3235_s21, 16, %s5754_s7, %s3217_s3  }
 0x606   : > { %s701_s23 = scalar_lea.vmem [#allocation24], %s5557_s4  ;;  %s5917_s28 = sld [smem:[#allocation49_spill]] }
 0x607   : > { %s3248_s5 = sshll.u32 %s701_s23, 4  ;;  %s3221_s22 = scalar_lea.sflag [#allocation25], %s5557_s4  ;;  %s5782_s5 = int_to_ptr.vmem [resolvable:$true] %s3248_s5 }
 0x608   : > { %s4946_s29 = scalar_lea.vmem %s5782_s5, 16  ;;  %s5085_s7 = smov [#allocation24]  }
 0x609   : > { %p4947_p9 = scmp.ne.s32.totalorder %s5782_s5, %s4946_s29  ;;  %s4950_s26 = sshll.u32 %s5085_s7, 4  ;;  %s4951_s26 = int_to_ptr.vmem [resolvable:$false] %s4950_s26 }
 0x60a   : > { %s4952_s21 = scalar_lea.vmem %s4951_s26, 32  ;;  %p4953_p12 = scmp.lt.s32.totalorder %s5782_s5, %s4951_s26 }
 0x60b   : > { %p4948_p8 = pnand %p4947_p9, %p5916_p13  ;;  %p4954_p6 = scmp.lt.s32.totalorder %s4952_s21, %s4946_s29 }
 0x60c   : > { %s5780_s16 = scalar_lea.hbm %s5917_s28, %s3790_s20 }
 0x60d   : > { %p4949_p3 = pneg %p4948_p8  ;;  %p4955_p0 = por %p4954_p6, %p4953_p12 }
 0x60f   : > { %p4956_p7 = pnand %p4955_p0, %p4949_p3 }
 0x685   : > { %v3208_v0 = vpop.xlane.xlu0 %3207 }
 0x686   : > { %v3213_v60 = vrot.slane %v3208_v0, %v2570_v46 }
 0x688   : > { %3215 = vst.msk [vmem:[%s701_s23] sm:$0x1] %vm2573_vm2, %v3213_v60 }
 0x689   : > { %4959 = shalt.err (!%p4956_p7)
}
 0x68a   : > { %s4960_s4 = scalar_lea.hbm %s5780_s16, 16  ;;  %s4964_s25 = scalar_lea.hbm %s5917_s28, 32 }
 0x68b   : > { %p4961_p5 = scmp.ne.s32.totalorder %s5780_s16, %s4960_s4  ;;  %p4965_p11 = scmp.lt.u32.totalorder %s5780_s16, %s5917_s28 }
 0x68c   : > { %p4966_p10 = scmp.lt.u32.totalorder %s4964_s25, %s4960_s4  ;;  %p4968_p9 = scmp.lt.u32.totalorder %s4960_s4, %s5780_s16 }
 0x68d   : > { %p4962_p2 = pnand %p4961_p5, %p5916_p13 }
 0x68e   : > { %p4967_p1 = por %p4966_p10, %p4965_p11 }
 0x68f   : > { %p4963_p4 = pneg %p4962_p2 }
 0x690   : > { %p4969_p8 = por %p4968_p9, %p4967_p1 }
 0x692   : > { %p4970_p3 = pnand %p4969_p8, %p4963_p4 }
 0x694   : > { %4973 = shalt.err (!%p4970_p3)
}
 0x695   : > { %4021 = dma.vmem_to_hbm [thread:$0]  (%p5916_p13), %s5782_s5, 16, %s5780_s16, %s3221_s22  }
 0x696 PF: > { %s5918_s1 = sld [smem:[#allocation36_spill]]  ;;  %p5919_p12 = scmp.ne.s32.totalorder %s5893_s27, 0 }
 0x697   : > { %p5920_p6 = scmp.ge.s32.totalorder %s5060_s18, 2 }
 0x699   : > { %p4066_p0 = pnand %p5920_p6, %p5919_p12 }
 0x69c   : > { %s3260_s29 = sand.u32 1, %s5918_s1  }
 0x69d   : > { %s3261_s7 = scalar_lea.sflag [#allocation4], %s3260_s29 }
 0x69e   : > { %5031 = dma.done.wait (!%p4066_p0), %s3261_s7, 16  }
 0x69f   : > { %5033 = vsyncadd (!%p4066_p0), %s3261_s7, 4294967280  ;;  %s3269_s26 = scalar_lea.sflag [#allocation25], %s3260_s29 }
 0x6a0   : > { %5035 = dma.done.wait (!%p4066_p0), %s3269_s26, 16  }
 0x6a1   : > { %5037 = vsyncadd (!%p4066_p0), %s3269_s26, 4294967280  ;;  %s42_s18 = sadd.s32 1, %s5060_s18   ;;  %s5921_s29 = smov %s5044_s30 }
 0x6a2   : > { %p39_p7 = scmp.ge.s32.totalorder %s42_s18, 4   ;;  %s5922_s30 = smov %s5048_s15 }
 0x6a3   : > { %s5923_s15 = smov %s5475_s0  ;;  %s5924_s16 = smov %s5056_s17 }
 0x6a4   : > { %s5925_s17 = smov %s5927_s19  ;;  %41 = sbr.rel (!%p39_p7) target bundleno = 26 (0x1a), region = 191 }
 0x6ab   :  { %3273 = vsyncpa [#allocation3], 1 }
 0x6ac   :  { %3275 = vsyncpa [#allocation3 + $0x1], 1 }
 0x6ad   :  { %3276 = vsyncpa [#allocation6], 1 }
 0x6ae   :  { %3278 = vsyncpa [#allocation6 + $0x1], 1 }
 0x6af   :  { %3279 = vsyncpa [#allocation9], 1 }
 0x6b0   :  { %3280 = vsyncpa [#allocation12], 1 }
 0x6b1   :  { %3281 = vsyncpa [#allocation15], 1 }
 0x6b2   :  { %3282 = vsyncpa [#allocation18], 1 }
 0x6b3   :  { %3283 = vsyncpa [#allocation21], 1 }
 0x6b4   :  { %3284 = vsyncpa [#allocation4], 1 }
 0x6b5   :  { %3286 = vsyncpa [#allocation4 + $0x1], 1 }
 0x6b6   :  { %3287 = vsyncpa [#allocation25], 1 }
 0x6b7   :  { %3289 = vsyncpa [#allocation25 + $0x1], 1 }

</bundles_post_ra>
